<compile_context>
chip_gen: v7x
topology: tpu7x:2x2x1
jax: 0.10.0
libtpu: 0.0.40
codegen_flags: <defaults>
</compile_context>

<pallas_src>
import functools

import jax
import jax.numpy as jnp
from jax.experimental import pallas as pl
from jax.experimental.pallas import tpu as pltpu


def _round_up(x, m):
    return (x + m - 1) // m * m


@functools.lru_cache(maxsize=None)
def _tpu_defaults():
    """(default tile_m, vmem_limit_bytes) chosen per TPU generation."""
    cap = 64 << 20
    try:
        cap = int(pltpu.get_tpu_info().vmem_capacity_bytes)
    except Exception:
        pass
    if cap >= (100 << 20):            # v5e / v6e: 128 MiB physical VMEM
        return 512, 64 << 20
    return 256, 36 << 20              # v7x: 64 MiB physical VMEM


def _pick_tile_m(m, k_p, cout_p, n_y, tile_default, vmem_limit):
    tile = min(tile_default, _round_up(m, 8))

    def working_set(t):
        # double-buffered bf16 patch tile + y(/yp) output tiles + weights.
        return 2 * t * k_p * 2 + n_y * 2 * t * cout_p * 2 + 2 * k_p * cout_p * 2

    while tile > 8 and working_set(tile) > vmem_limit // 2:
        tile = max(8, _round_up(tile // 2, 8))
    return tile


# ----------------------------------------------------------------------------
# Pass 1: tiled GEMM (bf16 -> f32 acc -> bf16 store) + per-channel stats
#         (optionally fused 1x1-projection GEMM on the same patch tile)
# ----------------------------------------------------------------------------
def _gemm_stats_kernel(*refs, fuse_proj):
    if fuse_proj:
        (p_ref, w_ref, wp_ref,
         y_ref, yp_ref, s_ref, q_ref, sp_ref, qp_ref) = refs
    else:
        p_ref, w_ref, y_ref, s_ref, q_ref = refs
        wp_ref = yp_ref = sp_ref = qp_ref = None

    i = pl.program_id(1)          # "arbitrary" M axis within this core split

    @pl.when(i == 0)
    def _():
        s_ref[...] = jnp.zeros_like(s_ref)
        q_ref[...] = jnp.zeros_like(q_ref)
        if fuse_proj:
            sp_ref[...] = jnp.zeros_like(sp_ref)
            qp_ref[...] = jnp.zeros_like(qp_ref)

    p = p_ref[...]                                      # (tile_m, k_p) bf16
    y = jnp.dot(p, w_ref[...], preferred_element_type=jnp.float32)
    y_ref[...] = y.astype(y_ref.dtype)                  # bf16 writeback
    # Stats from the f32 accumulation (zero-padded rows contribute nothing).
    s_ref[0:1, :] += jnp.sum(y, axis=0, keepdims=True)
    q_ref[0:1, :] += jnp.sum(y * y, axis=0, keepdims=True)

    if fuse_proj:
        kp = wp_ref.shape[0]                            # round_up(Cin, 128)
        yp = jnp.dot(p[:, :kp], wp_ref[...], preferred_element_type=jnp.float32)
        yp_ref[...] = yp.astype(yp_ref.dtype)
        sp_ref[0:1, :] += jnp.sum(yp, axis=0, keepdims=True)
        qp_ref[0:1, :] += jnp.sum(yp * yp, axis=0, keepdims=True)


# ----------------------------------------------------------------------------
# Pass 2: out = y*scale + shift (+ residual [*res_scale + res_shift]) (+ ReLU)
# ----------------------------------------------------------------------------
def _affine_kernel(*refs, relu, res_mode):
    if res_mode == 0:
        y_ref, sc_ref, sh_ref, o_ref = refs
        r_ref = rsc_ref = rsh_ref = None
    elif res_mode == 1:
        y_ref, sc_ref, sh_ref, r_ref, o_ref = refs
        rsc_ref = rsh_ref = None
    else:
        y_ref, sc_ref, sh_ref, r_ref, rsc_ref, rsh_ref, o_ref = refs

    out = y_ref[...].astype(jnp.float32) * sc_ref[...] + sh_ref[...]
    if res_mode == 1:
        out = out + r_ref[...].astype(jnp.float32)
    elif res_mode == 2:
        out = out + (r_ref[...].astype(jnp.float32) * rsc_ref[...] + rsh_ref[...])
    if relu:
        out = jnp.maximum(out, 0.0)
    o_ref[...] = out.astype(o_ref.dtype)


# ----------------------------------------------------------------------------
# Plain-JAX glue: im2col (layout transform only, bf16, center tap first)
# ----------------------------------------------------------------------------
def _im2col(x_nhwc, ksize, stride, pad, perm):
    n, h, w, c = x_nhwc.shape
    xp = jnp.pad(x_nhwc, ((0, 0), (pad, pad), (pad, pad), (0, 0)))
    ho = (h + 2 * pad - ksize) // stride + 1
    wo = (w + 2 * pad - ksize) // stride + 1
    cols = []
    for t in perm:
        kh, kw = divmod(t, ksize)
        cols.append(
            xp[:,
               kh:kh + (ho - 1) * stride + 1:stride,
               kw:kw + (wo - 1) * stride + 1:stride,
               :])
    patches = jnp.stack(cols, axis=-2)                 # (N,Ho,Wo,K*K,C)
    patches = patches.reshape(n * ho * wo, ksize * ksize * c)
    return patches, ho, wo


def _conv_gemm_stats(x_nhwc, w, *, stride, pad, wp=None,
                     tile_default, vmem_limit):
    n, _, _, cin = x_nhwc.shape
    ksize = w.shape[0]
    cout = w.shape[3]
    center = (ksize // 2) * ksize + (ksize // 2)
    perm = [center] + [t for t in range(ksize * ksize) if t != center]

    patches, ho, wo = _im2col(x_nhwc.astype(jnp.bfloat16), ksize, stride, pad, perm)
    m = n * ho * wo
    k = ksize * ksize * cin

    cout_p = _round_up(cout, 128)
    k_p = _round_up(k, 128)

    fuse_proj = wp is not None
    if fuse_proj:
        assert pad == ksize // 2 and wp.shape[0] == 1 and wp.shape[1] == 1

    n_y = 2 if fuse_proj else 1
    tile_m = _pick_tile_m(m, k_p, cout_p, n_y, tile_default, vmem_limit)
    n_splits = 2 if m > tile_m else 1          # feeds both TCs on v7x
    m_p = _round_up(m, n_splits * tile_m)
    grid_inner = m_p // (n_splits * tile_m)

    patches = jnp.pad(patches, ((0, m_p - m), (0, k_p - k)))
    w_mat = w.reshape(ksize * ksize, cin, cout)[jnp.asarray(perm)]
    w_mat = jnp.pad(w_mat.reshape(k, cout),
                    ((0, k_p - k), (0, cout_p - cout))).astype(jnp.bfloat16)

    row_map = lambda c, i: (c * grid_inner + i, 0)
    const_map = lambda c, i: (0, 0)
    stat_map = lambda c, i: (c, 0)

    inputs = [patches, w_mat]
    in_specs = [pl.BlockSpec((tile_m, k_p), row_map),
                pl.BlockSpec((k_p, cout_p), const_map)]

    out_shapes = [jax.ShapeDtypeStruct((m_p, cout_p), jnp.bfloat16)]
    out_specs = [pl.BlockSpec((tile_m, cout_p), row_map)]

    stat_shape = jax.ShapeDtypeStruct((8 * n_splits, cout_p), jnp.float32)
    stat_spec = pl.BlockSpec((8, cout_p), stat_map)

    if fuse_proj:
        kp_proj = min(_round_up(cin, 128), k_p)
        wp_mat = jnp.pad(wp.reshape(cin, cout),
                         ((0, kp_proj - cin), (0, cout_p - cout))).astype(jnp.bfloat16)
        inputs.append(wp_mat)
        in_specs.append(pl.BlockSpec((kp_proj, cout_p), const_map))
        out_shapes.append(jax.ShapeDtypeStruct((m_p, cout_p), jnp.bfloat16))
        out_specs.append(pl.BlockSpec((tile_m, cout_p), row_map))
        out_shapes += [stat_shape] * 4
        out_specs += [stat_spec] * 4
    else:
        out_shapes += [stat_shape] * 2
        out_specs += [stat_spec] * 2

    kern = functools.partial(_gemm_stats_kernel, fuse_proj=fuse_proj)
    outs = pl.pallas_call(
        kern,
        out_shape=tuple(out_shapes),
        grid_spec=pltpu.PrefetchScalarGridSpec(
            num_scalar_prefetch=0,
            grid=(n_splits, grid_inner),
            in_specs=in_specs,
            out_specs=tuple(out_specs)),
        compiler_params=pltpu.CompilerParams(
            dimension_semantics=("parallel", "arbitrary"),
            vmem_limit_bytes=vmem_limit),
    )(*inputs)

    if fuse_proj:
        y, yp, s, q, sp, qp = outs
    else:
        (y, s, q), yp, sp, qp = outs, None, None, None
    meta = dict(n=n, ho=ho, wo=wo, m=m, m_p=m_p, cout=cout, cout_p=cout_p,
                tile_m=tile_m)
    return y, s, q, yp, sp, qp, meta


def _bn_scale_shift(s, q, gamma_row, beta_row, count, eps):
    """Fold pass-1 stats into a single FMA (tiny (1, Cout_p) op between passes)."""
    inv = 1.0 / count
    s_tot = jnp.sum(s, axis=0, keepdims=True) * inv
    q_tot = jnp.sum(q, axis=0, keepdims=True) * inv
    var = jnp.maximum(q_tot - s_tot * s_tot, 0.0)     # E[y^2] - mean^2
    scale = gamma_row * jax.lax.rsqrt(var + eps)
    shift = beta_row - s_tot * scale
    return scale, shift


def _bn_affine_apply(y, scale, shift, *, relu, out_dtype, tile_m, vmem_limit,
                     residual=None, res_scale=None, res_shift=None):
    m_p, cp = y.shape
    grid_m = m_p // tile_m
    res_mode = 0 if residual is None else (1 if res_scale is None else 2)

    row_map = lambda i: (i, 0)
    const_map = lambda i: (0, 0)

    args = [y, scale, shift]
    in_specs = [pl.BlockSpec((tile_m, cp), row_map),
                pl.BlockSpec((1, cp), const_map),
                pl.BlockSpec((1, cp), const_map)]
    if res_mode:
        args.append(residual)
        in_specs.append(pl.BlockSpec((tile_m, cp), row_map))
    if res_mode == 2:
        args += [res_scale, res_shift]
        in_specs += [pl.BlockSpec((1, cp), const_map),
                     pl.BlockSpec((1, cp), const_map)]

    kern = functools.partial(_affine_kernel, relu=relu, res_mode=res_mode)
    return pl.pallas_call(
        kern,
        out_shape=jax.ShapeDtypeStruct((m_p, cp), out_dtype),
        grid_spec=pltpu.PrefetchScalarGridSpec(
            num_scalar_prefetch=0,
            grid=(grid_m,),
            in_specs=in_specs,
            out_specs=pl.BlockSpec((tile_m, cp), row_map)),
        compiler_params=pltpu.CompilerParams(
            dimension_semantics=("parallel",),
            vmem_limit_bytes=vmem_limit),
    )(*args)


def _pad_row(v, cp):
    v = v.astype(jnp.float32).reshape(1, -1)
    return jnp.pad(v, ((0, 0), (0, cp - v.shape[1])))


def _match_rows(a, rows):
    if a.shape[0] == rows:
        return a
    if a.shape[0] > rows:
        return a[:rows]
    return jnp.pad(a, ((0, rows - a.shape[0]), (0, 0)))


# ----------------------------------------------------------------------------
# Parameter construction (deterministic, PyTorch-style uniform init).
# ----------------------------------------------------------------------------
def _conv_weight(key, kh, kw, cin, cout):
    fan_in = cin * kh * kw
    bound = 1.0 / (fan_in ** 0.5)
    return jax.random.uniform(key, (kh, kw, cin, cout), jnp.float32, -bound, bound)


class StandardBlockPallas:
    """Pallas re-implementation of standard_block (ResNet basic block)."""

    def __init__(self, filters, projection_shortcut, strides,
                 first_num_filters, key, tile_m=None, eps=1e-5):
        cin, cout = first_num_filters, filters
        self.strides = strides
        self.eps = eps
        td, vl = _tpu_defaults()
        self.tile_default = int(tile_m) if tile_m is not None else td
        self.vmem_limit = vl
        k1, k2, k3 = jax.random.split(key, 3)

        self.w1 = _conv_weight(k1, 3, 3, cin, cout)
        self.g1 = jnp.ones((cout,), jnp.float32)
        self.bt1 = jnp.zeros((cout,), jnp.float32)

        self.w2 = _conv_weight(k2, 3, 3, cout, cout)
        self.g2 = jnp.ones((cout,), jnp.float32)
        self.bt2 = jnp.zeros((cout,), jnp.float32)

        self.has_projection = bool(projection_shortcut)
        if self.has_projection:
            self.wp = _conv_weight(k3, 1, 1, cin, cout)
            self.gp = jnp.ones((cout,), jnp.float32)
            self.btp = jnp.zeros((cout,), jnp.float32)

    def __call__(self, x_nchw):
        x = jnp.transpose(x_nchw, (0, 2, 3, 1))            # NCHW -> NHWC
        td, vl, eps = self.tile_default, self.vmem_limit, self.eps

        # conv1 pass 1 (+ fused 1x1 projection GEMM + both stats)
        wp = self.wp if self.has_projection else None
        y1, s1, q1, yp, sp, qp, m1d = _conv_gemm_stats(
            x, self.w1, stride=self.strides, pad=1, wp=wp,
            tile_default=td, vmem_limit=vl)
        cp, cout, m1 = m1d["cout_p"], m1d["cout"], m1d["m"]

        sc1, sh1 = _bn_scale_shift(s1, q1, _pad_row(self.g1, cp),
                                   _pad_row(self.bt1, cp), m1, eps)
        # conv1 pass 2: h = relu(y1*scale+shift), stored bf16 (re-read 9x below)
        h = _bn_affine_apply(y1, sc1, sh1, relu=True, out_dtype=jnp.bfloat16,
                             tile_m=m1d["tile_m"], vmem_limit=vl)
        h_nhwc = h[:m1, :cout].reshape(m1d["n"], m1d["ho"], m1d["wo"], cout)

        # conv2 pass 1
        y2, s2, q2, _, _, _, m2d = _conv_gemm_stats(
            h_nhwc, self.w2, stride=1, pad=1, tile_default=td, vmem_limit=vl)
        m2 = m2d["m"]
        sc2, sh2 = _bn_scale_shift(s2, q2, _pad_row(self.g2, cp),
                                   _pad_row(self.bt2, cp), m2, eps)

        # conv2 pass 2: BN + residual (+ its deferred BN) + final ReLU
        if self.has_projection:
            scp, shp = _bn_scale_shift(sp, qp, _pad_row(self.gp, cp),
                                       _pad_row(self.btp, cp), m1, eps)
            res = _match_rows(yp, m2d["m_p"])
            out = _bn_affine_apply(y2, sc2, sh2, relu=True,
                                   out_dtype=jnp.float32,
                                   tile_m=m2d["tile_m"], vmem_limit=vl,
                                   residual=res, res_scale=scp, res_shift=shp)
        else:
            res = x.reshape(m2, cout).astype(jnp.bfloat16)
            res = jnp.pad(res, ((0, m2d["m_p"] - m2), (0, cp - cout)))
            out = _bn_affine_apply(y2, sc2, sh2, relu=True,
                                   out_dtype=jnp.float32,
                                   tile_m=m2d["tile_m"], vmem_limit=vl,
                                   residual=res)

        out = out[:m2, :cout].reshape(m2d["n"], m2d["ho"], m2d["wo"], cout)
        return jnp.transpose(out, (0, 3, 1, 2))            # NHWC -> NCHW


# ----------------------------------------------------------------------------
# Pure-JAX reference (same bf16 convention) for a tolerance check
# ----------------------------------------------------------------------------
def _ref_conv_bn(x, w, gamma, beta, *, stride, pad, relu, residual=None, eps=1e-5):
    y = jax.lax.conv_general_dilated(
        x.astype(jnp.bfloat16), w.astype(jnp.bfloat16),
        window_strides=(stride, stride),
        padding=[(pad, pad), (pad, pad)],
        dimension_numbers=("NHWC", "HWIO", "NHWC"),
        preferred_element_type=jnp.float32)
    mean = jnp.mean(y, axis=(0, 1, 2), keepdims=True)
    var = jnp.mean(jnp.square(y - mean), axis=(0, 1, 2), keepdims=True)
    y = (y - mean) * jax.lax.rsqrt(var + eps) * gamma + beta
    if residual is not None:
        y = y + residual.astype(jnp.float32)
    if relu:
        y = jnp.maximum(y, 0.0)
    return y


def _ref_block(x_nchw, blk):
    x = jnp.transpose(x_nchw, (0, 2, 3, 1))
    if blk.has_projection:
        shortcut = _ref_conv_bn(x, blk.wp, blk.gp, blk.btp,
                                stride=blk.strides, pad=0, relu=False)
    else:
        shortcut = x
    h = _ref_conv_bn(x, blk.w1, blk.g1, blk.bt1,
                     stride=blk.strides, pad=1, relu=True)
    h = h.astype(jnp.bfloat16)     # matches the Pallas path's bf16 activation
    out = _ref_conv_bn(h, blk.w2, blk.g2, blk.bt2,
                       stride=1, pad=1, relu=True, residual=shortcut)
    return jnp.transpose(out, (0, 3, 1, 2))


# ----------------------------------------------------------------------------
if __name__ == "__main__":
    key = jax.random.PRNGKey(0)
    kx, kprm = jax.random.split(key)

    # Input matches the PyTorch NCHW convention.
    x = jax.random.normal(kx, (2, 4, 16, 16), jnp.float32)

    # Down-sampling block with fused projection shortcut (stride 2, 4 -> 8 ch).
    block = StandardBlockPallas(filters=8, projection_shortcut=True,
                                strides=2, first_num_filters=4, key=kprm)
    y = jax.block_until_ready(jax.jit(block.__call__)(x))
    assert y.shape == (2, 8, 8, 8), y.shape
    assert bool(jnp.all(y >= 0.0))                    # final ReLU
    y_ref = jax.block_until_ready(_ref_block(x, block))
    assert jnp.allclose(y, y_ref, atol=5e-2, rtol=5e-2), \
        float(jnp.max(jnp.abs(y - y_ref)))

    # Identity-shortcut block (stride 1, channels preserved).
    block2 = StandardBlockPallas(filters=4, projection_shortcut=False,
                                 strides=1, first_num_filters=4, key=kprm)
    y2 = jax.block_until_ready(jax.jit(block2.__call__)(x))
    assert y2.shape == (2, 4, 16, 16), y2.shape
    y2_ref = jax.block_until_ready(_ref_block(x, block2))
    assert jnp.allclose(y2, y2_ref, atol=5e-2, rtol=5e-2), \
        float(jnp.max(jnp.abs(y2 - y2_ref)))

    # Larger batch with a forced small tile: exercises the 2-way core split and
    # multi-step stats accumulation along the "arbitrary" M axis.
    x3 = jax.random.normal(kx, (4, 4, 16, 16), jnp.float32)
    block3 = StandardBlockPallas(filters=4, projection_shortcut=False,
                                 strides=1, first_num_filters=4, key=kprm,
                                 tile_m=128)
    y3 = jax.block_until_ready(jax.jit(block3.__call__)(x3))
    assert y3.shape == (4, 4, 16, 16), y3.shape
    y3_ref = jax.block_until_ready(_ref_block(x3, block3))
    assert jnp.allclose(y3, y3_ref, atol=5e-2, rtol=5e-2), \
        float(jnp.max(jnp.abs(y3 - y3_ref)))

    print("KERNEL_OK")
</pallas_src>

<mosaic_0001>
module attributes {stable_mosaic.version = 11 : i64} {
  func.func @_affine_kernel(%arg0: i32, %arg1: memref<128x128xbf16, #tpu.memory_space<vmem>>, %arg2: memref<1x128xf32, #tpu.memory_space<vmem>>, %arg3: memref<1x128xf32, #tpu.memory_space<vmem>>, %arg4: memref<128x128xbf16, #tpu.memory_space<vmem>>) attributes {dimension_semantics = [#tpu.dimension_semantics<parallel>], iteration_bounds = array<i64: 1>, scalar_prefetch = 0 : i64, scratch_operands = 0 : i64, tpu.core_type = #tpu.core_type<tc>, window_params = [{transform_indices = @transform_0, window_bounds = array<i64: 128, 128>}, {pipeline_mode = #tpu.pipeline_mode<synchronous>, transform_indices = @transform_1, window_bounds = array<i64: 1, 128>}, {pipeline_mode = #tpu.pipeline_mode<synchronous>, transform_indices = @transform_2, window_bounds = array<i64: 1, 128>}, {transform_indices = @transform_3, window_bounds = array<i64: 128, 128>}]} {
    %c0 = arith.constant 0 : index
    %c0_0 = arith.constant 0 : index
    %0 = vector.load %arg1[%c0, %c0_0] : memref<128x128xbf16, #tpu.memory_space<vmem>>, vector<128x128xbf16>
    %1 = arith.extf %0 : vector<128x128xbf16> to vector<128x128xf32>
    %c0_1 = arith.constant 0 : index
    %c0_2 = arith.constant 0 : index
    %2 = vector.load %arg2[%c0_1, %c0_2] : memref<1x128xf32, #tpu.memory_space<vmem>>, vector<1x128xf32>
    %3 = vector.broadcast %2 : vector<1x128xf32> to vector<128x128xf32>
    %4 = arith.mulf %1, %3 : vector<128x128xf32>
    %c0_3 = arith.constant 0 : index
    %c0_4 = arith.constant 0 : index
    %5 = vector.load %arg3[%c0_3, %c0_4] : memref<1x128xf32, #tpu.memory_space<vmem>>, vector<1x128xf32>
    %6 = vector.broadcast %5 : vector<1x128xf32> to vector<128x128xf32>
    %7 = arith.addf %4, %6 : vector<128x128xf32>
    %cst = arith.constant 0.000000e+00 : f32
    %8 = vector.broadcast %cst : f32 to vector<128x128xf32>
    %9 = arith.maximumf %7, %8 : vector<128x128xf32>
    %10 = arith.truncf %9 : vector<128x128xf32> to vector<128x128xbf16>
    %c0_5 = arith.constant 0 : index
    %c0_6 = arith.constant 0 : index
    %11 = vector.load %arg4[%c0_5, %c0_6] : memref<128x128xbf16, #tpu.memory_space<vmem>>, vector<128x128xbf16>
    tpu.vector_store %arg4[%c0_5, %c0_6], %10 {strides = array<i32>} : memref<128x128xbf16, #tpu.memory_space<vmem>>, vector<128x128xbf16>,
    return
  }
  func.func @transform_0(%arg0: i32) -> (i32, i32) {
    %c0_i32 = arith.constant 0 : i32
    %c0_i32_0 = arith.constant 0 : i32
    return %arg0, %c0_i32 : i32, i32
  }
  func.func @transform_1(%arg0: i32) -> (i32, i32) {
    %c0_i32 = arith.constant 0 : i32
    %c0_i32_0 = arith.constant 0 : i32
    %c0_i32_1 = arith.constant 0 : i32
    return %c0_i32, %c0_i32_0 : i32, i32
  }
  func.func @transform_2(%arg0: i32) -> (i32, i32) {
    %c0_i32 = arith.constant 0 : i32
    %c0_i32_0 = arith.constant 0 : i32
    %c0_i32_1 = arith.constant 0 : i32
    return %c0_i32, %c0_i32_0 : i32, i32
  }
  func.func @transform_3(%arg0: i32) -> (i32, i32) {
    %c0_i32 = arith.constant 0 : i32
    %c0_i32_0 = arith.constant 0 : i32
    return %arg0, %c0_i32 : i32, i32
  }
}

module attributes {stable_mosaic.version = 11 : i64} {
  func.func @_gemm_stats_kernel(%arg0: i32, %arg1: i32, %arg2: memref<128x128xbf16, #tpu.memory_space<vmem>>, %arg3: memref<128x128xbf16, #tpu.memory_space<vmem>>, %arg4: memref<128x128xbf16, #tpu.memory_space<vmem>>, %arg5: memref<128x128xbf16, #tpu.memory_space<vmem>>, %arg6: memref<128x128xbf16, #tpu.memory_space<vmem>>, %arg7: memref<8x128xf32, #tpu.memory_space<vmem>>, %arg8: memref<8x128xf32, #tpu.memory_space<vmem>>, %arg9: memref<8x128xf32, #tpu.memory_space<vmem>>, %arg10: memref<8x128xf32, #tpu.memory_space<vmem>>) attributes {dimension_semantics = [#tpu.dimension_semantics<parallel>, #tpu.dimension_semantics<arbitrary>], iteration_bounds = array<i64: 1, 1>, scalar_prefetch = 0 : i64, scratch_operands = 0 : i64, tpu.core_type = #tpu.core_type<tc>, window_params = [{transform_indices = @transform_0, window_bounds = array<i64: 128, 128>}, {pipeline_mode = #tpu.pipeline_mode<synchronous>, transform_indices = @transform_1, window_bounds = array<i64: 128, 128>}, {pipeline_mode = #tpu.pipeline_mode<synchronous>, transform_indices = @transform_2, window_bounds = array<i64: 128, 128>}, {transform_indices = @transform_3, window_bounds = array<i64: 128, 128>}, {transform_indices = @transform_4, window_bounds = array<i64: 128, 128>}, {transform_indices = @transform_5, window_bounds = array<i64: 8, 128>}, {transform_indices = @transform_6, window_bounds = array<i64: 8, 128>}, {transform_indices = @transform_7, window_bounds = array<i64: 8, 128>}, {transform_indices = @transform_8, window_bounds = array<i64: 8, 128>}]} {
    %c0_i32 = arith.constant 0 : i32
    %0 = arith.cmpi eq, %arg1, %c0_i32 : i32
    %1 = arith.extui %0 : i1 to i32
    %c0_i32_0 = arith.constant 0 : i32
    %2 = arith.cmpi ne, %1, %c0_i32_0 : i32
    scf.if %2 {
      %cst_31 = arith.constant 0.000000e+00 : f32
      %34 = vector.broadcast %cst_31 : f32 to vector<8x128xf32>
      %c0_32 = arith.constant 0 : index
      %c0_33 = arith.constant 0 : index
      %35 = vector.load %arg7[%c0_32, %c0_33] : memref<8x128xf32, #tpu.memory_space<vmem>>, vector<8x128xf32>
      tpu.vector_store %arg7[%c0_32, %c0_33], %34 {strides = array<i32>} : memref<8x128xf32, #tpu.memory_space<vmem>>, vector<8x128xf32>,
      %cst_34 = arith.constant 0.000000e+00 : f32
      %36 = vector.broadcast %cst_34 : f32 to vector<8x128xf32>
      %c0_35 = arith.constant 0 : index
      %c0_36 = arith.constant 0 : index
      %37 = vector.load %arg8[%c0_35, %c0_36] : memref<8x128xf32, #tpu.memory_space<vmem>>, vector<8x128xf32>
      tpu.vector_store %arg8[%c0_35, %c0_36], %36 {strides = array<i32>} : memref<8x128xf32, #tpu.memory_space<vmem>>, vector<8x128xf32>,
      %cst_37 = arith.constant 0.000000e+00 : f32
      %38 = vector.broadcast %cst_37 : f32 to vector<8x128xf32>
      %c0_38 = arith.constant 0 : index
      %c0_39 = arith.constant 0 : index
      %39 = vector.load %arg9[%c0_38, %c0_39] : memref<8x128xf32, #tpu.memory_space<vmem>>, vector<8x128xf32>
      tpu.vector_store %arg9[%c0_38, %c0_39], %38 {strides = array<i32>} : memref<8x128xf32, #tpu.memory_space<vmem>>, vector<8x128xf32>,
      %cst_40 = arith.constant 0.000000e+00 : f32
      %40 = vector.broadcast %cst_40 : f32 to vector<8x128xf32>
      %c0_41 = arith.constant 0 : index
      %c0_42 = arith.constant 0 : index
      %41 = vector.load %arg10[%c0_41, %c0_42] : memref<8x128xf32, #tpu.memory_space<vmem>>, vector<8x128xf32>
      tpu.vector_store %arg10[%c0_41, %c0_42], %40 {strides = array<i32>} : memref<8x128xf32, #tpu.memory_space<vmem>>, vector<8x128xf32>,
    } else {
    }
    %c0 = arith.constant 0 : index
    %c0_1 = arith.constant 0 : index
    %3 = vector.load %arg2[%c0, %c0_1] : memref<128x128xbf16, #tpu.memory_space<vmem>>, vector<128x128xbf16>
    %c0_2 = arith.constant 0 : index
    %c0_3 = arith.constant 0 : index
    %4 = vector.load %arg3[%c0_2, %c0_3] : memref<128x128xbf16, #tpu.memory_space<vmem>>, vector<128x128xbf16>
    %cst = arith.constant dense<0.000000e+00> : vector<128x128xf32>
    %5 = tpu.matmul %3, %4, %cst {dimension_numbers = #tpu.dot_dimension_numbers<[1], [0], [0], [1], [0, 0, 1, 1], [], []>} : vector<128x128xbf16>, vector<128x128xbf16>, vector<128x128xf32> -> vector<128x128xf32>
    %6 = arith.truncf %5 : vector<128x128xf32> to vector<128x128xbf16>
    %c0_4 = arith.constant 0 : index
    %c0_5 = arith.constant 0 : index
    %7 = vector.load %arg5[%c0_4, %c0_5] : memref<128x128xbf16, #tpu.memory_space<vmem>>, vector<128x128xbf16>
    tpu.vector_store %arg5[%c0_4, %c0_5], %6 {strides = array<i32>} : memref<128x128xbf16, #tpu.memory_space<vmem>>, vector<128x128xbf16>,
    %c0_6 = arith.constant 0 : index
    %c0_7 = arith.constant 0 : index
    %8 = vector.load %arg7[%c0_6, %c0_7] : memref<8x128xf32, #tpu.memory_space<vmem>>, vector<1x128xf32>
    %cst_8 = arith.constant dense<0.000000e+00> : vector<128xf32>
    %9 = vector.multi_reduction <add>, %5, %cst_8 [0] : vector<128x128xf32> to vector<128xf32>
    %10 = vector.shape_cast %9 : vector<128xf32> to vector<1x128xf32>
    %11 = arith.addf %8, %10 : vector<1x128xf32>
    %c0_9 = arith.constant 0 : index
    %c0_10 = arith.constant 0 : index
    %12 = vector.load %arg7[%c0_9, %c0_10] : memref<8x128xf32, #tpu.memory_space<vmem>>, vector<1x128xf32>
    tpu.vector_store %arg7[%c0_9, %c0_10], %11 {strides = array<i32>} : memref<8x128xf32, #tpu.memory_space<vmem>>, vector<1x128xf32>,
    %c0_11 = arith.constant 0 : index
    %c0_12 = arith.constant 0 : index
    %13 = vector.load %arg8[%c0_11, %c0_12] : memref<8x128xf32, #tpu.memory_space<vmem>>, vector<1x128xf32>
    %14 = arith.mulf %5, %5 : vector<128x128xf32>
    %cst_13 = arith.constant dense<0.000000e+00> : vector<128xf32>
    %15 = vector.multi_reduction <add>, %14, %cst_13 [0] : vector<128x128xf32> to vector<128xf32>
    %16 = vector.shape_cast %15 : vector<128xf32> to vector<1x128xf32>
    %17 = arith.addf %13, %16 : vector<1x128xf32>
    %c0_14 = arith.constant 0 : index
    %c0_15 = arith.constant 0 : index
    %18 = vector.load %arg8[%c0_14, %c0_15] : memref<8x128xf32, #tpu.memory_space<vmem>>, vector<1x128xf32>
    tpu.vector_store %arg8[%c0_14, %c0_15], %17 {strides = array<i32>} : memref<8x128xf32, #tpu.memory_space<vmem>>, vector<1x128xf32>,
    %c0_16 = arith.constant 0 : index
    %c0_17 = arith.constant 0 : index
    %19 = vector.load %arg4[%c0_16, %c0_17] : memref<128x128xbf16, #tpu.memory_space<vmem>>, vector<128x128xbf16>
    %cst_18 = arith.constant dense<0.000000e+00> : vector<128x128xf32>
    %20 = tpu.matmul %3, %19, %cst_18 {dimension_numbers = #tpu.dot_dimension_numbers<[1], [0], [0], [1], [0, 0, 1, 1], [], []>} : vector<128x128xbf16>, vector<128x128xbf16>, vector<128x128xf32> -> vector<128x128xf32>
    %21 = arith.truncf %20 : vector<128x128xf32> to vector<128x128xbf16>
    %c0_19 = arith.constant 0 : index
    %c0_20 = arith.constant 0 : index
    %22 = vector.load %arg6[%c0_19, %c0_20] : memref<128x128xbf16, #tpu.memory_space<vmem>>, vector<128x128xbf16>
    tpu.vector_store %arg6[%c0_19, %c0_20], %21 {strides = array<i32>} : memref<128x128xbf16, #tpu.memory_space<vmem>>, vector<128x128xbf16>,
    %c0_21 = arith.constant 0 : index
    %c0_22 = arith.constant 0 : index
    %23 = vector.load %arg9[%c0_21, %c0_22] : memref<8x128xf32, #tpu.memory_space<vmem>>, vector<1x128xf32>
    %cst_23 = arith.constant dense<0.000000e+00> : vector<128xf32>
    %24 = vector.multi_reduction <add>, %20, %cst_23 [0] : vector<128x128xf32> to vector<128xf32>
    %25 = vector.shape_cast %24 : vector<128xf32> to vector<1x128xf32>
    %26 = arith.addf %23, %25 : vector<1x128xf32>
    %c0_24 = arith.constant 0 : index
    %c0_25 = arith.constant 0 : index
    %27 = vector.load %arg9[%c0_24, %c0_25] : memref<8x128xf32, #tpu.memory_space<vmem>>, vector<1x128xf32>
    tpu.vector_store %arg9[%c0_24, %c0_25], %26 {strides = array<i32>} : memref<8x128xf32, #tpu.memory_space<vmem>>, vector<1x128xf32>,
    %c0_26 = arith.constant 0 : index
    %c0_27 = arith.constant 0 : index
    %28 = vector.load %arg10[%c0_26, %c0_27] : memref<8x128xf32, #tpu.memory_space<vmem>>, vector<1x128xf32>
    %29 = arith.mulf %20, %20 : vector<128x128xf32>
    %cst_28 = arith.constant dense<0.000000e+00> : vector<128xf32>
    %30 = vector.multi_reduction <add>, %29, %cst_28 [0] : vector<128x128xf32> to vector<128xf32>
    %31 = vector.shape_cast %30 : vector<128xf32> to vector<1x128xf32>
    %32 = arith.addf %28, %31 : vector<1x128xf32>
    %c0_29 = arith.constant 0 : index
    %c0_30 = arith.constant 0 : index
    %33 = vector.load %arg10[%c0_29, %c0_30] : memref<8x128xf32, #tpu.memory_space<vmem>>, vector<1x128xf32>
    tpu.vector_store %arg10[%c0_29, %c0_30], %32 {strides = array<i32>} : memref<8x128xf32, #tpu.memory_space<vmem>>, vector<1x128xf32>,
    return
  }
  func.func @transform_0(%arg0: i32, %arg1: i32) -> (i32, i32) {
    %c1_i32 = arith.constant 1 : i32
    %0 = arith.muli %arg0, %c1_i32 : i32
    %1 = arith.addi %0, %arg1 : i32
    %c0_i32 = arith.constant 0 : i32
    %c0_i32_0 = arith.constant 0 : i32
    return %1, %c0_i32 : i32, i32
  }
  func.func @transform_1(%arg0: i32, %arg1: i32) -> (i32, i32) {
    %c0_i32 = arith.constant 0 : i32
    %c0_i32_0 = arith.constant 0 : i32
    %c0_i32_1 = arith.constant 0 : i32
    return %c0_i32, %c0_i32_0 : i32, i32
  }
  func.func @transform_2(%arg0: i32, %arg1: i32) -> (i32, i32) {
    %c0_i32 = arith.constant 0 : i32
    %c0_i32_0 = arith.constant 0 : i32
    %c0_i32_1 = arith.constant 0 : i32
    return %c0_i32, %c0_i32_0 : i32, i32
  }
  func.func @transform_3(%arg0: i32, %arg1: i32) -> (i32, i32) {
    %c1_i32 = arith.constant 1 : i32
    %0 = arith.muli %arg0, %c1_i32 : i32
    %1 = arith.addi %0, %arg1 : i32
    %c0_i32 = arith.constant 0 : i32
    %c0_i32_0 = arith.constant 0 : i32
    return %1, %c0_i32 : i32, i32
  }
  func.func @transform_4(%arg0: i32, %arg1: i32) -> (i32, i32) {
    %c1_i32 = arith.constant 1 : i32
    %0 = arith.muli %arg0, %c1_i32 : i32
    %1 = arith.addi %0, %arg1 : i32
    %c0_i32 = arith.constant 0 : i32
    %c0_i32_0 = arith.constant 0 : i32
    return %1, %c0_i32 : i32, i32
  }
  func.func @transform_5(%arg0: i32, %arg1: i32) -> (i32, i32) {
    %c0_i32 = arith.constant 0 : i32
    %c0_i32_0 = arith.constant 0 : i32
    return %arg0, %c0_i32 : i32, i32
  }
  func.func @transform_6(%arg0: i32, %arg1: i32) -> (i32, i32) {
    %c0_i32 = arith.constant 0 : i32
    %c0_i32_0 = arith.constant 0 : i32
    return %arg0, %c0_i32 : i32, i32
  }
  func.func @transform_7(%arg0: i32, %arg1: i32) -> (i32, i32) {
    %c0_i32 = arith.constant 0 : i32
    %c0_i32_0 = arith.constant 0 : i32
    return %arg0, %c0_i32 : i32, i32
  }
  func.func @transform_8(%arg0: i32, %arg1: i32) -> (i32, i32) {
    %c0_i32 = arith.constant 0 : i32
    %c0_i32_0 = arith.constant 0 : i32
    return %arg0, %c0_i32 : i32, i32
  }
}

module attributes {stable_mosaic.version = 11 : i64} {
  func.func @_gemm_stats_kernel(%arg0: i32, %arg1: i32, %arg2: memref<128x128xbf16, #tpu.memory_space<vmem>>, %arg3: memref<128x128xbf16, #tpu.memory_space<vmem>>, %arg4: memref<128x128xbf16, #tpu.memory_space<vmem>>, %arg5: memref<8x128xf32, #tpu.memory_space<vmem>>, %arg6: memref<8x128xf32, #tpu.memory_space<vmem>>) attributes {dimension_semantics = [#tpu.dimension_semantics<parallel>, #tpu.dimension_semantics<arbitrary>], iteration_bounds = array<i64: 1, 1>, scalar_prefetch = 0 : i64, scratch_operands = 0 : i64, tpu.core_type = #tpu.core_type<tc>, window_params = [{transform_indices = @transform_0, window_bounds = array<i64: 128, 128>}, {pipeline_mode = #tpu.pipeline_mode<synchronous>, transform_indices = @transform_1, window_bounds = array<i64: 128, 128>}, {transform_indices = @transform_2, window_bounds = array<i64: 128, 128>}, {transform_indices = @transform_3, window_bounds = array<i64: 8, 128>}, {transform_indices = @transform_4, window_bounds = array<i64: 8, 128>}]} {
    %c0_i32 = arith.constant 0 : i32
    %0 = arith.cmpi eq, %arg1, %c0_i32 : i32
    %1 = arith.extui %0 : i1 to i32
    %c0_i32_0 = arith.constant 0 : i32
    %2 = arith.cmpi ne, %1, %c0_i32_0 : i32
    scf.if %2 {
      %cst_16 = arith.constant 0.000000e+00 : f32
      %19 = vector.broadcast %cst_16 : f32 to vector<8x128xf32>
      %c0_17 = arith.constant 0 : index
      %c0_18 = arith.constant 0 : index
      %20 = vector.load %arg5[%c0_17, %c0_18] : memref<8x128xf32, #tpu.memory_space<vmem>>, vector<8x128xf32>
      tpu.vector_store %arg5[%c0_17, %c0_18], %19 {strides = array<i32>} : memref<8x128xf32, #tpu.memory_space<vmem>>, vector<8x128xf32>,
      %cst_19 = arith.constant 0.000000e+00 : f32
      %21 = vector.broadcast %cst_19 : f32 to vector<8x128xf32>
      %c0_20 = arith.constant 0 : index
      %c0_21 = arith.constant 0 : index
      %22 = vector.load %arg6[%c0_20, %c0_21] : memref<8x128xf32, #tpu.memory_space<vmem>>, vector<8x128xf32>
      tpu.vector_store %arg6[%c0_20, %c0_21], %21 {strides = array<i32>} : memref<8x128xf32, #tpu.memory_space<vmem>>, vector<8x128xf32>,
    } else {
    }
    %c0 = arith.constant 0 : index
    %c0_1 = arith.constant 0 : index
    %3 = vector.load %arg2[%c0, %c0_1] : memref<128x128xbf16, #tpu.memory_space<vmem>>, vector<128x128xbf16>
    %c0_2 = arith.constant 0 : index
    %c0_3 = arith.constant 0 : index
    %4 = vector.load %arg3[%c0_2, %c0_3] : memref<128x128xbf16, #tpu.memory_space<vmem>>, vector<128x128xbf16>
    %cst = arith.constant dense<0.000000e+00> : vector<128x128xf32>
    %5 = tpu.matmul %3, %4, %cst {dimension_numbers = #tpu.dot_dimension_numbers<[1], [0], [0], [1], [0, 0, 1, 1], [], []>} : vector<128x128xbf16>, vector<128x128xbf16>, vector<128x128xf32> -> vector<128x128xf32>
    %6 = arith.truncf %5 : vector<128x128xf32> to vector<128x128xbf16>
    %c0_4 = arith.constant 0 : index
    %c0_5 = arith.constant 0 : index
    %7 = vector.load %arg4[%c0_4, %c0_5] : memref<128x128xbf16, #tpu.memory_space<vmem>>, vector<128x128xbf16>
    tpu.vector_store %arg4[%c0_4, %c0_5], %6 {strides = array<i32>} : memref<128x128xbf16, #tpu.memory_space<vmem>>, vector<128x128xbf16>,
    %c0_6 = arith.constant 0 : index
    %c0_7 = arith.constant 0 : index
    %8 = vector.load %arg5[%c0_6, %c0_7] : memref<8x128xf32, #tpu.memory_space<vmem>>, vector<1x128xf32>
    %cst_8 = arith.constant dense<0.000000e+00> : vector<128xf32>
    %9 = vector.multi_reduction <add>, %5, %cst_8 [0] : vector<128x128xf32> to vector<128xf32>
    %10 = vector.shape_cast %9 : vector<128xf32> to vector<1x128xf32>
    %11 = arith.addf %8, %10 : vector<1x128xf32>
    %c0_9 = arith.constant 0 : index
    %c0_10 = arith.constant 0 : index
    %12 = vector.load %arg5[%c0_9, %c0_10] : memref<8x128xf32, #tpu.memory_space<vmem>>, vector<1x128xf32>
    tpu.vector_store %arg5[%c0_9, %c0_10], %11 {strides = array<i32>} : memref<8x128xf32, #tpu.memory_space<vmem>>, vector<1x128xf32>,
    %c0_11 = arith.constant 0 : index
    %c0_12 = arith.constant 0 : index
    %13 = vector.load %arg6[%c0_11, %c0_12] : memref<8x128xf32, #tpu.memory_space<vmem>>, vector<1x128xf32>
    %14 = arith.mulf %5, %5 : vector<128x128xf32>
    %cst_13 = arith.constant dense<0.000000e+00> : vector<128xf32>
    %15 = vector.multi_reduction <add>, %14, %cst_13 [0] : vector<128x128xf32> to vector<128xf32>
    %16 = vector.shape_cast %15 : vector<128xf32> to vector<1x128xf32>
    %17 = arith.addf %13, %16 : vector<1x128xf32>
    %c0_14 = arith.constant 0 : index
    %c0_15 = arith.constant 0 : index
    %18 = vector.load %arg6[%c0_14, %c0_15] : memref<8x128xf32, #tpu.memory_space<vmem>>, vector<1x128xf32>
    tpu.vector_store %arg6[%c0_14, %c0_15], %17 {strides = array<i32>} : memref<8x128xf32, #tpu.memory_space<vmem>>, vector<1x128xf32>,
    return
  }
  func.func @transform_0(%arg0: i32, %arg1: i32) -> (i32, i32) {
    %c1_i32 = arith.constant 1 : i32
    %0 = arith.muli %arg0, %c1_i32 : i32
    %1 = arith.addi %0, %arg1 : i32
    %c0_i32 = arith.constant 0 : i32
    %c0_i32_0 = arith.constant 0 : i32
    return %1, %c0_i32 : i32, i32
  }
  func.func @transform_1(%arg0: i32, %arg1: i32) -> (i32, i32) {
    %c0_i32 = arith.constant 0 : i32
    %c0_i32_0 = arith.constant 0 : i32
    %c0_i32_1 = arith.constant 0 : i32
    return %c0_i32, %c0_i32_0 : i32, i32
  }
  func.func @transform_2(%arg0: i32, %arg1: i32) -> (i32, i32) {
    %c1_i32 = arith.constant 1 : i32
    %0 = arith.muli %arg0, %c1_i32 : i32
    %1 = arith.addi %0, %arg1 : i32
    %c0_i32 = arith.constant 0 : i32
    %c0_i32_0 = arith.constant 0 : i32
    return %1, %c0_i32 : i32, i32
  }
  func.func @transform_3(%arg0: i32, %arg1: i32) -> (i32, i32) {
    %c0_i32 = arith.constant 0 : i32
    %c0_i32_0 = arith.constant 0 : i32
    return %arg0, %c0_i32 : i32, i32
  }
  func.func @transform_4(%arg0: i32, %arg1: i32) -> (i32, i32) {
    %c0_i32 = arith.constant 0 : i32
    %c0_i32_0 = arith.constant 0 : i32
    return %arg0, %c0_i32 : i32, i32
  }
}

module attributes {stable_mosaic.version = 11 : i64} {
  func.func @_affine_kernel(%arg0: i32, %arg1: memref<128x128xbf16, #tpu.memory_space<vmem>>, %arg2: memref<1x128xf32, #tpu.memory_space<vmem>>, %arg3: memref<1x128xf32, #tpu.memory_space<vmem>>, %arg4: memref<128x128xbf16, #tpu.memory_space<vmem>>, %arg5: memref<1x128xf32, #tpu.memory_space<vmem>>, %arg6: memref<1x128xf32, #tpu.memory_space<vmem>>, %arg7: memref<128x128xf32, #tpu.memory_space<vmem>>) attributes {dimension_semantics = [#tpu.dimension_semantics<parallel>], iteration_bounds = array<i64: 1>, scalar_prefetch = 0 : i64, scratch_operands = 0 : i64, tpu.core_type = #tpu.core_type<tc>, window_params = [{transform_indices = @transform_0, window_bounds = array<i64: 128, 128>}, {pipeline_mode = #tpu.pipeline_mode<synchronous>, transform_indices = @transform_1, window_bounds = array<i64: 1, 128>}, {pipeline_mode = #tpu.pipeline_mode<synchronous>, transform_indices = @transform_2, window_bounds = array<i64: 1, 128>}, {transform_indices = @transform_3, window_bounds = array<i64: 128, 128>}, {pipeline_mode = #tpu.pipeline_mode<synchronous>, transform_indices = @transform_4, window_bounds = array<i64: 1, 128>}, {pipeline_mode = #tpu.pipeline_mode<synchronous>, transform_indices = @transform_5, window_bounds = array<i64: 1, 128>}, {transform_indices = @transform_6, window_bounds = array<i64: 128, 128>}]} {
    %c0 = arith.constant 0 : index
    %c0_0 = arith.constant 0 : index
    %0 = vector.load %arg1[%c0, %c0_0] : memref<128x128xbf16, #tpu.memory_space<vmem>>, vector<128x128xbf16>
    %1 = arith.extf %0 : vector<128x128xbf16> to vector<128x128xf32>
    %c0_1 = arith.constant 0 : index
    %c0_2 = arith.constant 0 : index
    %2 = vector.load %arg2[%c0_1, %c0_2] : memref<1x128xf32, #tpu.memory_space<vmem>>, vector<1x128xf32>
    %3 = vector.broadcast %2 : vector<1x128xf32> to vector<128x128xf32>
    %4 = arith.mulf %1, %3 : vector<128x128xf32>
    %c0_3 = arith.constant 0 : index
    %c0_4 = arith.constant 0 : index
    %5 = vector.load %arg3[%c0_3, %c0_4] : memref<1x128xf32, #tpu.memory_space<vmem>>, vector<1x128xf32>
    %6 = vector.broadcast %5 : vector<1x128xf32> to vector<128x128xf32>
    %7 = arith.addf %4, %6 : vector<128x128xf32>
    %c0_5 = arith.constant 0 : index
    %c0_6 = arith.constant 0 : index
    %8 = vector.load %arg4[%c0_5, %c0_6] : memref<128x128xbf16, #tpu.memory_space<vmem>>, vector<128x128xbf16>
    %9 = arith.extf %8 : vector<128x128xbf16> to vector<128x128xf32>
    %c0_7 = arith.constant 0 : index
    %c0_8 = arith.constant 0 : index
    %10 = vector.load %arg5[%c0_7, %c0_8] : memref<1x128xf32, #tpu.memory_space<vmem>>, vector<1x128xf32>
    %11 = vector.broadcast %10 : vector<1x128xf32> to vector<128x128xf32>
    %12 = arith.mulf %9, %11 : vector<128x128xf32>
    %c0_9 = arith.constant 0 : index
    %c0_10 = arith.constant 0 : index
    %13 = vector.load %arg6[%c0_9, %c0_10] : memref<1x128xf32, #tpu.memory_space<vmem>>, vector<1x128xf32>
    %14 = vector.broadcast %13 : vector<1x128xf32> to vector<128x128xf32>
    %15 = arith.addf %12, %14 : vector<128x128xf32>
    %16 = arith.addf %7, %15 : vector<128x128xf32>
    %cst = arith.constant 0.000000e+00 : f32
    %17 = vector.broadcast %cst : f32 to vector<128x128xf32>
    %18 = arith.maximumf %16, %17 : vector<128x128xf32>
    %c0_11 = arith.constant 0 : index
    %c0_12 = arith.constant 0 : index
    %19 = vector.load %arg7[%c0_11, %c0_12] : memref<128x128xf32, #tpu.memory_space<vmem>>, vector<128x128xf32>
    tpu.vector_store %arg7[%c0_11, %c0_12], %18 {strides = array<i32>} : memref<128x128xf32, #tpu.memory_space<vmem>>, vector<128x128xf32>,
    return
  }
  func.func @transform_0(%arg0: i32) -> (i32, i32) {
    %c0_i32 = arith.constant 0 : i32
    %c0_i32_0 = arith.constant 0 : i32
    return %arg0, %c0_i32 : i32, i32
  }
  func.func @transform_1(%arg0: i32) -> (i32, i32) {
    %c0_i32 = arith.constant 0 : i32
    %c0_i32_0 = arith.constant 0 : i32
    %c0_i32_1 = arith.constant 0 : i32
    return %c0_i32, %c0_i32_0 : i32, i32
  }
  func.func @transform_2(%arg0: i32) -> (i32, i32) {
    %c0_i32 = arith.constant 0 : i32
    %c0_i32_0 = arith.constant 0 : i32
    %c0_i32_1 = arith.constant 0 : i32
    return %c0_i32, %c0_i32_0 : i32, i32
  }
  func.func @transform_3(%arg0: i32) -> (i32, i32) {
    %c0_i32 = arith.constant 0 : i32
    %c0_i32_0 = arith.constant 0 : i32
    return %arg0, %c0_i32 : i32, i32
  }
  func.func @transform_4(%arg0: i32) -> (i32, i32) {
    %c0_i32 = arith.constant 0 : i32
    %c0_i32_0 = arith.constant 0 : i32
    %c0_i32_1 = arith.constant 0 : i32
    return %c0_i32, %c0_i32_0 : i32, i32
  }
  func.func @transform_5(%arg0: i32) -> (i32, i32) {
    %c0_i32 = arith.constant 0 : i32
    %c0_i32_0 = arith.constant 0 : i32
    %c0_i32_1 = arith.constant 0 : i32
    return %c0_i32, %c0_i32_0 : i32, i32
  }
  func.func @transform_6(%arg0: i32) -> (i32, i32) {
    %c0_i32 = arith.constant 0 : i32
    %c0_i32_0 = arith.constant 0 : i32
    return %arg0, %c0_i32 : i32, i32
  }
}

</mosaic_0001>

<bundles_post_ra>
// kernel: a_call__.5
= control target key start
LH: loop header
LB: loop body
LE: loop exit
PB: predicated region body
PF: predicated region fallthrough
CT: control target
= control target key end

     0   :  { %s422_s0 = inlined_call_operand.vmem [shape: bf16[128,128], index: 0, kind: input, shape index: {}]   ;;  %s423_s1 = inlined_call_operand.vmem [shape: f32[1,128], index: 1, kind: input, shape index: {}]   ;;  %s424_s2 = inlined_call_operand.vmem [shape: f32[1,128], index: 2, kind: input, shape index: {}]   ;;  %s425_s3 = inlined_call_operand.vmem [shape: bf16[128,128], index: 3, kind: output, shape index: {}]  }
   0x1   :  { %v227_v0 = vld [vmem:[%s422_s0] sm:$0xff]   ;;  %v298_v4 = vld [vmem:[%s422_s0 + $0x8] sm:$0xff]   ;;  %v299_v5 = vld [vmem:[%s422_s0 + $0x10] sm:$0xff]  }
   0x2   :  { %v338_v1 = vld [vmem:[%s423_s1] ss:$0 sm:$0xff]  ;;  %v228_v2 = vunpack.c.l.bf16 %v227_v0  ;;  %v229_v3 = vunpack.c.h.bf16 %v227_v0  ;;  %v300_v6 = vld [vmem:[%s422_s0 + $0x18] sm:$0xff]   ;;  %v232_v8 = vunpack.c.l.bf16 %v298_v4  ;;  %v233_v9 = vunpack.c.h.bf16 %v298_v4  ;;  %v302_v33 = vld [vmem:[%s422_s0 + $0x28] sm:$0xff]  }
   0x3   :  { %v352_v7 = vld [vmem:[%s424_s2] ss:$0 sm:$0xff]  ;;  %v236_v10 = vunpack.c.l.bf16 %v299_v5  ;;  %v237_v11 = vunpack.c.h.bf16 %v299_v5  ;;  %v240_v14 = vunpack.c.l.bf16 %v300_v6  ;;  %v241_v15 = vunpack.c.h.bf16 %v300_v6  ;;  %v303_v38 = vld [vmem:[%s422_s0 + $0x30] sm:$0xff]   ;;  %v304_v43 = vld [vmem:[%s422_s0 + $0x38] sm:$0xff]  }
   0x4   :  { %v53_v12 = vmul.f32 %v228_v2, %v338_v1  ;;  %v54_v13 = vmul.f32 %v229_v3, %v338_v1  ;;  %v55_v16 = vmul.f32 %v232_v8, %v338_v1  ;;  %v56_v17 = vmul.f32 %v233_v9, %v338_v1  ;;  %v301_v28 = vld [vmem:[%s422_s0 + $0x20] sm:$0xff]  }
   0x5   :  { %v57_v18 = vmul.f32 %v236_v10, %v338_v1  ;;  %v58_v19 = vmul.f32 %v237_v11, %v338_v1  ;;  %v59_v22 = vmul.f32 %v240_v14, %v338_v1  ;;  %v60_v23 = vmul.f32 %v241_v15, %v338_v1 }
   0x6   :  { %v76_v20 = vadd.f32 %v352_v7, %v53_v12  ;;  %v77_v21 = vadd.f32 %v352_v7, %v54_v13  ;;  %v78_v24 = vadd.f32 %v352_v7, %v55_v16  ;;  %v79_v25 = vadd.f32 %v352_v7, %v56_v17 }
   0x7   :  { %v80_v26 = vadd.f32 %v352_v7, %v57_v18  ;;  %v81_v27 = vadd.f32 %v352_v7, %v58_v19  ;;  %v82_v31 = vadd.f32 %v352_v7, %v59_v22  ;;  %v83_v32 = vadd.f32 %v352_v7, %v60_v23 }
   0x8   :  { %v92_v29 = vmax.f32 %v76_v20, 0.0  ;;  %v93_v30 = vmax.f32 %v77_v21, 0.0  ;;  %v94_v34 = vmax.f32 %v78_v24, 0.0  ;;  %v95_v35 = vmax.f32 %v79_v25, 0.0 }
   0x9   :  { %v96_v36 = vmax.f32 %v80_v26, 0.0  ;;  %v97_v37 = vmax.f32 %v81_v27, 0.0  ;;  %v98_v40 = vmax.f32 %v82_v31, 0.0  ;;  %v99_v41 = vmax.f32 %v83_v32, 0.0 }
   0xa   :  { %v261_v39 = vpack.c.bf16 %v93_v30, %v92_v29  ;;  %v244_v42 = vunpack.c.l.bf16 %v301_v28  ;;  %v266_v44 = vpack.c.bf16 %v95_v35, %v94_v34  ;;  %v245_v46 = vunpack.c.h.bf16 %v301_v28 }
   0xb   :  { %v271_v45 = vpack.c.bf16 %v97_v37, %v96_v36  ;;  %v248_v47 = vunpack.c.l.bf16 %v302_v33  ;;  %v276_v48 = vpack.c.bf16 %v99_v41, %v98_v40  ;;  %v249_v50 = vunpack.c.h.bf16 %v302_v33 }
   0xc   :  { %262 = vst [vmem:[%s425_s3] sm:$0xff] %v261_v39   ;;  %v61_v49 = vmul.f32 %v244_v42, %v338_v1  ;;  %v252_v51 = vunpack.c.l.bf16 %v303_v38  ;;  %305 = vst [vmem:[%s425_s3 + $0x8] sm:$0xff] %v266_v44   ;;  %v62_v52 = vmul.f32 %v245_v46, %v338_v1  ;;  %v253_v54 = vunpack.c.h.bf16 %v303_v38 }
   0xd   :  { %306 = vst [vmem:[%s425_s3 + $0x10] sm:$0xff] %v271_v45   ;;  %v63_v53 = vmul.f32 %v248_v47, %v338_v1  ;;  %v256_v55 = vunpack.c.l.bf16 %v304_v43  ;;  %307 = vst [vmem:[%s425_s3 + $0x18] sm:$0xff] %v276_v48   ;;  %v64_v57 = vmul.f32 %v249_v50, %v338_v1  ;;  %v257_v59 = vunpack.c.h.bf16 %v304_v43 }
   0xe   :  { %v84_v56 = vadd.f32 %v352_v7, %v61_v49  ;;  %v65_v58 = vmul.f32 %v252_v51, %v338_v1  ;;  %v85_v60 = vadd.f32 %v352_v7, %v62_v52  ;;  %v66_v62 = vmul.f32 %v253_v54, %v338_v1 }
   0xf   :  { %v86_v61 = vadd.f32 %v352_v7, %v63_v53  ;;  %v67_v63 = vmul.f32 %v256_v55, %v338_v1  ;;  %v87_v2 = vadd.f32 %v352_v7, %v64_v57  ;;  %v68_v4 = vmul.f32 %v257_v59, %v338_v1 }
  0x10   :  { %v100_v0 = vmax.f32 %v84_v56, 0.0  ;;  %v88_v3 = vadd.f32 %v352_v7, %v65_v58  ;;  %v101_v5 = vmax.f32 %v85_v60, 0.0  ;;  %v89_v8 = vadd.f32 %v352_v7, %v66_v62 }
  0x11   :  { %v102_v6 = vmax.f32 %v86_v61, 0.0  ;;  %v90_v9 = vadd.f32 %v352_v7, %v67_v63  ;;  %v103_v10 = vmax.f32 %v87_v2, 0.0  ;;  %v91_v12 = vadd.f32 %v352_v7, %v68_v4 }
  0x12   :  { %v104_v11 = vmax.f32 %v88_v3, 0.0  ;;  %v281_v13 = vpack.c.bf16 %v101_v5, %v100_v0  ;;  %v105_v14 = vmax.f32 %v89_v8, 0.0 }
  0x13   :  { %v106_v15 = vmax.f32 %v90_v9, 0.0  ;;  %v286_v16 = vpack.c.bf16 %v103_v10, %v102_v6  ;;  %v107_v17 = vmax.f32 %v91_v12, 0.0 }
  0x14   :  { %308 = vst [vmem:[%s425_s3 + $0x20] sm:$0xff] %v281_v13   ;;  %v291_v1 = vpack.c.bf16 %v105_v14, %v104_v11 }
  0x15   :  { %309 = vst [vmem:[%s425_s3 + $0x28] sm:$0xff] %v286_v16   ;;  %v296_v18 = vpack.c.bf16 %v107_v17, %v106_v15 }
  0x16   :  { %310 = vst [vmem:[%s425_s3 + $0x30] sm:$0xff] %v291_v1  }
  0x17   :  { %311 = vst [vmem:[%s425_s3 + $0x38] sm:$0xff] %v296_v18  }

// kernel: a_call__.4
= control target key start
LH: loop header
LB: loop body
LE: loop exit
PB: predicated region body
PF: predicated region fallthrough
CT: control target
= control target key end

     0   :  { %v1130_v24 = vmov 0.0   ;;  %s1332_s1 = inlined_call_operand.vmem [shape: bf16[128,128], index: 1, kind: input, shape index: {}]   ;;  %s1333_s2 = inlined_call_operand.vmem [shape: bf16[128,128], index: 2, kind: input, shape index: {}]   ;;  %s1334_s0 = inlined_call_operand.vmem [shape: bf16[128,128], index: 0, kind: input, shape index: {}]   ;;  %s1335_s5 = inlined_call_operand.vmem [shape: f32[8,128], index: 5, kind: output, shape index: {2}]   ;;  %s1336_s6 = inlined_call_operand.vmem [shape: f32[8,128], index: 6, kind: output, shape index: {3}]   ;;  %s1337_s7 = inlined_call_operand.vmem [shape: f32[8,128], index: 7, kind: output, shape index: {4}]   ;;  %s1338_s8 = inlined_call_operand.vmem [shape: f32[8,128], index: 8, kind: output, shape index: {5}]   ;;  %s1339_s3 = inlined_call_operand.vmem [shape: bf16[128,128], index: 3, kind: output, shape index: {0}]   ;;  %s1340_s4 = inlined_call_operand.vmem [shape: bf16[128,128], index: 4, kind: output, shape index: {1}]  }
   0x1   :  { %v1106_v0 = vld [vmem:[%s1332_s1] sm:$0xff]   ;;  %v1108_v2 = vld [vmem:[%s1332_s1 + $0x8] sm:$0xff]   ;;  %v1110_v4 = vld [vmem:[%s1332_s1 + $0x10] sm:$0xff]   ;;  %75 = vst [vmem:[%s1335_s5] sm:$0xff] %v1130_v24 }
   0x2   :  { %v1107_v1 = vld [vmem:[%s1333_s2] sm:$0xff]   ;;  %1041 = vmatprep.subr.bf16.mxu0 %v1106_v0  ;;  %v1109_v3 = vld [vmem:[%s1333_s2 + $0x8] sm:$0xff]   ;;  %v1111_v5 = vld [vmem:[%s1333_s2 + $0x10] sm:$0xff]   ;;  %76 = vst [vmem:[%s1336_s6] sm:$0xff] %v1130_v24 }
   0x3   :  { %1073 = vmatprep.subr.bf16.mxu1 %v1107_v1  ;;  %1042 = vmatpush3.bf16.msra.mxu0 %v1106_v0  ;;  %v1112_v6 = vld [vmem:[%s1332_s1 + $0x18] sm:$0xff]   ;;  %v1114_v8 = vld [vmem:[%s1332_s1 + $0x20] sm:$0xff]   ;;  %v1116_v10 = vld [vmem:[%s1332_s1 + $0x28] sm:$0xff]   ;;  %77 = vst [vmem:[%s1337_s7] sm:$0xff] %v1130_v24 }
   0x4   :  { %1074 = vmatpush3.bf16.msra.mxu1 %v1107_v1  ;;  %1043 = vmatprep.subr.bf16.mxu0 %v1108_v2  ;;  %v1113_v7 = vld [vmem:[%s1333_s2 + $0x18] sm:$0xff]   ;;  %v1115_v9 = vld [vmem:[%s1333_s2 + $0x20] sm:$0xff]   ;;  %v1117_v12 = vld [vmem:[%s1333_s2 + $0x28] sm:$0xff]   ;;  %78 = vst [vmem:[%s1338_s8] sm:$0xff] %v1130_v24 }
   0x5   :  { %1075 = vmatprep.subr.bf16.mxu1 %v1109_v3  ;;  %v1122_v11 = vld [vmem:[%s1334_s0] sm:$0xff]   ;;  %v1118_v13 = vld [vmem:[%s1332_s1 + $0x30] sm:$0xff]   ;;  %v1120_v15 = vld [vmem:[%s1332_s1 + $0x38] sm:$0xff]  }
   0x6   :  { %1057 = vmatprep.mubr.bf16.mxu0 %v1122_v11  ;;  %1089 = vmatprep.mubr.bf16.mxu1 %v1122_v11  ;;  %v1119_v14 = vld [vmem:[%s1333_s2 + $0x30] sm:$0xff]   ;;  %v1121_v16 = vld [vmem:[%s1333_s2 + $0x38] sm:$0xff]   ;;  %v1123_v17 = vld [vmem:[%s1334_s0 + $0x8] sm:$0xff]  }
   0x7   :  { %1044 = vmatpush3.bf16.msra.mxu0 %v1108_v2  ;;  %v1124_v18 = vld [vmem:[%s1334_s0 + $0x10] sm:$0xff]   ;;  %v1125_v19 = vld [vmem:[%s1334_s0 + $0x18] sm:$0xff]   ;;  %v1126_v20 = vld [vmem:[%s1334_s0 + $0x20] sm:$0xff]  }
   0x8   :  { %1076 = vmatpush3.bf16.msra.mxu1 %v1109_v3  ;;  %1045 = vmatprep.subr.bf16.mxu0 %v1110_v4  ;;  %v1127_v21 = vld [vmem:[%s1334_s0 + $0x28] sm:$0xff]   ;;  %v1128_v22 = vld [vmem:[%s1334_s0 + $0x30] sm:$0xff]   ;;  %v1129_v23 = vld [vmem:[%s1334_s0 + $0x38] sm:$0xff]  }
   0x9   :  { %1077 = vmatprep.subr.bf16.mxu1 %v1111_v5 }
   0xb   :  { %1046 = vmatpush3.bf16.msra.mxu0 %v1110_v4 }
   0xc   :  { %1078 = vmatpush3.bf16.msra.mxu1 %v1111_v5  ;;  %1047 = vmatprep.subr.bf16.mxu0 %v1112_v6 }
   0xd   :  { %1079 = vmatprep.subr.bf16.mxu1 %v1113_v7 }
   0xf   :  { %1048 = vmatpush3.bf16.msra.mxu0 %v1112_v6 }
  0x10   :  { %1080 = vmatpush3.bf16.msra.mxu1 %v1113_v7  ;;  %1049 = vmatprep.subr.bf16.mxu0 %v1114_v8 }
  0x11   :  { %1081 = vmatprep.subr.bf16.mxu1 %v1115_v9 }
  0x13   :  { %1050 = vmatpush3.bf16.msra.mxu0 %v1114_v8 }
  0x14   :  { %1082 = vmatpush3.bf16.msra.mxu1 %v1115_v9  ;;  %1051 = vmatprep.subr.bf16.mxu0 %v1116_v10 }
  0x15   :  { %1083 = vmatprep.subr.bf16.mxu1 %v1117_v12 }
  0x17   :  { %1052 = vmatpush3.bf16.msra.mxu0 %v1116_v10 }
  0x18   :  { %1084 = vmatpush3.bf16.msra.mxu1 %v1117_v12  ;;  %1053 = vmatprep.subr.bf16.mxu0 %v1118_v13 }
  0x19   :  { %1085 = vmatprep.subr.bf16.mxu1 %v1119_v14 }
  0x1b   :  { %1054 = vmatpush3.bf16.msra.mxu0 %v1118_v13 }
  0x1c   :  { %1086 = vmatpush3.bf16.msra.mxu1 %v1119_v14  ;;  %1055 = vmatprep.subr.bf16.mxu0 %v1120_v15 }
  0x1d   :  { %1087 = vmatprep.subr.bf16.mxu1 %v1121_v16 }
  0x1f   :  { %1056 = vmatpush3.bf16.msra.mxu0 %v1120_v15 }
  0x20   :  { %1088 = vmatpush3.bf16.msra.mxu1 %v1121_v16 }
  0x22   :  { %1058 = vmatmul.mubr.bf16.vlgmr.msra.gmra.mrb[0].mxu0 %v1123_v17 }
  0x23   :  { %1090 = vmatmul.mubr.bf16.vlgmr.msra.gmra.mrb[0].mxu1 %v1123_v17  ;;  %1061 = vmatprep.mubr.bf16.mxu0 %v1124_v18 }
  0x24   :  { %1093 = vmatprep.mubr.bf16.mxu1 %v1124_v18 }
  0x2a   :  { %1062 = vmatmul.mubr.bf16.gmra.mrb[4].mxu0 %v1125_v19 }
  0x2b   :  { %1094 = vmatmul.mubr.bf16.gmra.mrb[4].mxu1 %v1125_v19  ;;  %1065 = vmatprep.mubr.bf16.mxu0 %v1126_v20 }
  0x2c   :  { %1097 = vmatprep.mubr.bf16.mxu1 %v1126_v20 }
  0x32   :  { %1066 = vmatmul.mubr.bf16.gmra.mrb[8].mxu0 %v1127_v21 }
  0x33   :  { %1098 = vmatmul.mubr.bf16.gmra.mrb[8].mxu1 %v1127_v21  ;;  %1069 = vmatprep.mubr.bf16.mxu0 %v1128_v22 }
  0x34   :  { %1101 = vmatprep.mubr.bf16.mxu1 %v1128_v22 }
  0x3a   :  { %1070 = vmatmul.mubr.bf16.gmra.mrb[12].mxu0 %v1129_v23 }
  0x3b   :  { %1102 = vmatmul.mubr.bf16.gmra.mrb[12].mxu1 %v1129_v23 }
  0xf5   :  { %v1059_v25 = vpop.f32.mrb[0].mxu0 }
  0xf6   :  { %v1091_v26 = vpop.f32.mrb[0].mxu1  ;;  %v241_v27 = vpop.f32.mrb[1].mxu0  ;;  %v411_v43 = vmul.f32 %v1059_v25, %v1059_v25 }
  0xf7   :  { %v546_v28 = vpop.f32.mrb[1].mxu1  ;;  %v1060_v29 = vpop.f32.mrb[2].mxu0  ;;  %v409_v30 = vmul.f32 %v241_v27, %v241_v27  ;;  %v716_v45 = vmul.f32 %v1091_v26, %v1091_v26 }
  0xf8   :  { %v923_v31 = vpack.c.bf16 %v1060_v29, %v1059_v25  ;;  %v1092_v32 = vpop.f32.mrb[2].mxu1  ;;  %v244_v33 = vpop.f32.mrb[3].mxu0  ;;  %v714_v34 = vmul.f32 %v546_v28, %v546_v28  ;;  %v412_v49 = vmul.f32 %v1060_v29, %v1060_v29 }
  0xf9   :  { %v963_v35 = vpack.c.bf16 %v1092_v32, %v1091_v26  ;;  %v918_v36 = vpack.c.bf16 %v244_v33, %v241_v27  ;;  %v385_v37 = vadd.f32 %v244_v33, %v241_v27  ;;  %v549_v38 = vpop.f32.mrb[3].mxu1  ;;  %v410_v39 = vmul.f32 %v244_v33, %v244_v33 }
  0xfa   :  { %995 = vst [vmem:[%s1339_s3 + $0x8] sm:$0xff] %v923_v31   ;;  %v958_v40 = vpack.c.bf16 %v549_v38, %v546_v28  ;;  %v690_v41 = vadd.f32 %v549_v38, %v546_v28  ;;  %v715_v42 = vmul.f32 %v549_v38, %v549_v38  ;;  %v717_v52 = vmul.f32 %v1092_v32, %v1092_v32 }
  0xfb   :  { %1002 = vst [vmem:[%s1340_s4 + $0x8] sm:$0xff] %v963_v35   ;;  %919 = vst [vmem:[%s1339_s3] sm:$0xff] %v918_v36   ;;  %v386_v44 = vadd.f32 %v1059_v25, %v385_v37  ;;  %v425_v46 = vadd.f32 %v410_v39, %v409_v30 }
  0xfc   :  { %959 = vst [vmem:[%s1340_s4] sm:$0xff] %v958_v40   ;;  %v691_v47 = vadd.f32 %v1091_v26, %v690_v41  ;;  %v730_v48 = vadd.f32 %v715_v42, %v714_v34 }
  0xfd   :  { %v1063_v50 = vpop.f32.mrb[4].mxu0  ;;  %v387_v51 = vadd.f32 %v1060_v29, %v386_v44  ;;  %v426_v53 = vadd.f32 %v425_v46, %v411_v43 }
  0xfe   :  { %v731_v54 = vadd.f32 %v730_v48, %v716_v45  ;;  %v1095_v55 = vpop.f32.mrb[4].mxu1  ;;  %v257_v56 = vpop.f32.mrb[5].mxu0  ;;  %v692_v57 = vadd.f32 %v1092_v32, %v691_v47  ;;  %v415_v15 = vmul.f32 %v1063_v50, %v1063_v50 }
  0xff   :  { %v388_v58 = vadd.f32 %v387_v51, %v257_v56  ;;  %v413_v59 = vmul.f32 %v257_v56, %v257_v56  ;;  %v562_v60 = vpop.f32.mrb[5].mxu1  ;;  %v1064_v61 = vpop.f32.mrb[6].mxu0  ;;  %v427_v62 = vadd.f32 %v426_v53, %v412_v49  ;;  %v720_v17 = vmul.f32 %v1095_v55, %v1095_v55 }
 0x100   :  { %v693_v63 = vadd.f32 %v692_v57, %v562_v60  ;;  %v718_v0 = vmul.f32 %v562_v60, %v562_v60  ;;  %v732_v1 = vadd.f32 %v731_v54, %v717_v52  ;;  %v1096_v2 = vpop.f32.mrb[6].mxu1  ;;  %v260_v3 = vpop.f32.mrb[7].mxu0  ;;  %v933_v4 = vpack.c.bf16 %v1064_v61, %v1063_v50 }
 0x101   :  { %v973_v5 = vpack.c.bf16 %v1096_v2, %v1095_v55  ;;  %v565_v6 = vpop.f32.mrb[7].mxu1  ;;  %v428_v7 = vadd.f32 %v427_v62, %v413_v59  ;;  %v928_v9 = vpack.c.bf16 %v260_v3, %v257_v56  ;;  %v389_v10 = vadd.f32 %v388_v58, %v260_v3 }
 0x102   :  { %v733_v8 = vadd.f32 %v732_v1, %v718_v0  ;;  %997 = vst [vmem:[%s1339_s3 + $0x18] sm:$0xff] %v933_v4   ;;  %v414_v11 = vmul.f32 %v260_v3, %v260_v3  ;;  %v968_v12 = vpack.c.bf16 %v565_v6, %v562_v60  ;;  %v694_v13 = vadd.f32 %v693_v63, %v565_v6 }
 0x103   :  { %1004 = vst [vmem:[%s1340_s4 + $0x18] sm:$0xff] %v973_v5   ;;  %v719_v14 = vmul.f32 %v565_v6, %v565_v6  ;;  %996 = vst [vmem:[%s1339_s3 + $0x10] sm:$0xff] %v928_v9   ;;  %v390_v16 = vadd.f32 %v1063_v50, %v389_v10  ;;  %v416_v22 = vmul.f32 %v1064_v61, %v1064_v61 }
 0x104   :  { %v429_v18 = vadd.f32 %v428_v7, %v414_v11  ;;  %1003 = vst [vmem:[%s1340_s4 + $0x10] sm:$0xff] %v968_v12   ;;  %v695_v19 = vadd.f32 %v1095_v55, %v694_v13  ;;  %v721_v26 = vmul.f32 %v1096_v2, %v1096_v2 }
 0x105   :  { %v734_v20 = vadd.f32 %v733_v8, %v719_v14  ;;  %v1067_v21 = vpop.f32.mrb[8].mxu0  ;;  %v391_v25 = vadd.f32 %v1064_v61, %v390_v16 }
 0x106   :  { %v1099_v23 = vpop.f32.mrb[8].mxu1  ;;  %v273_v24 = vpop.f32.mrb[9].mxu0  ;;  %v430_v27 = vadd.f32 %v429_v18, %v415_v15  ;;  %v696_v33 = vadd.f32 %v1096_v2, %v695_v19  ;;  %v419_v52 = vmul.f32 %v1067_v21, %v1067_v21 }
 0x107   :  { %v735_v28 = vadd.f32 %v734_v20, %v720_v17  ;;  %v417_v29 = vmul.f32 %v273_v24, %v273_v24  ;;  %v578_v30 = vpop.f32.mrb[9].mxu1  ;;  %v1068_v31 = vpop.f32.mrb[10].mxu0  ;;  %v392_v32 = vadd.f32 %v391_v25, %v273_v24  ;;  %v724_v55 = vmul.f32 %v1099_v23, %v1099_v23 }
 0x108   :  { %v722_v34 = vmul.f32 %v578_v30, %v578_v30  ;;  %v943_v35 = vpack.c.bf16 %v1068_v31, %v1067_v21  ;;  %v1100_v36 = vpop.f32.mrb[10].mxu1  ;;  %v276_v37 = vpop.f32.mrb[11].mxu0  ;;  %v431_v38 = vadd.f32 %v430_v27, %v416_v22  ;;  %v697_v42 = vadd.f32 %v696_v33, %v578_v30 }
 0x109   :  { %v736_v39 = vadd.f32 %v735_v28, %v721_v26  ;;  %v983_v40 = vpack.c.bf16 %v1100_v36, %v1099_v23  ;;  %v581_v41 = vpop.f32.mrb[11].mxu1  ;;  %v938_v43 = vpack.c.bf16 %v276_v37, %v273_v24  ;;  %v393_v44 = vadd.f32 %v392_v32, %v276_v37 }
 0x10a   :  { %999 = vst [vmem:[%s1339_s3 + $0x28] sm:$0xff] %v943_v35   ;;  %v432_v45 = vadd.f32 %v431_v38, %v417_v29  ;;  %v418_v47 = vmul.f32 %v276_v37, %v276_v37  ;;  %v978_v48 = vpack.c.bf16 %v581_v41, %v578_v30  ;;  %v698_v50 = vadd.f32 %v697_v42, %v581_v41 }
 0x10b   :  { %v737_v46 = vadd.f32 %v736_v39, %v722_v34  ;;  %1006 = vst [vmem:[%s1340_s4 + $0x28] sm:$0xff] %v983_v40   ;;  %998 = vst [vmem:[%s1339_s3 + $0x20] sm:$0xff] %v938_v43   ;;  %v394_v49 = vadd.f32 %v1067_v21, %v393_v44  ;;  %v723_v51 = vmul.f32 %v581_v41, %v581_v41 }
 0x10c   :  { %v433_v53 = vadd.f32 %v432_v45, %v418_v47  ;;  %1005 = vst [vmem:[%s1340_s4 + $0x20] sm:$0xff] %v978_v48   ;;  %v699_v56 = vadd.f32 %v1099_v23, %v698_v50  ;;  %v420_v61 = vmul.f32 %v1068_v31, %v1068_v31  ;;  %v725_v62 = vmul.f32 %v1100_v36, %v1100_v36 }
 0x10d   :  { %v1071_v54 = vpop.f32.mrb[12].mxu0  ;;  %v738_v57 = vadd.f32 %v737_v46, %v723_v51  ;;  %v395_v60 = vadd.f32 %v1068_v31, %v394_v49 }
 0x10e   :  { %v1103_v58 = vpop.f32.mrb[12].mxu1  ;;  %v289_v59 = vpop.f32.mrb[13].mxu0  ;;  %v434_v63 = vadd.f32 %v433_v53, %v419_v52  ;;  %v700_v5 = vadd.f32 %v1100_v36, %v699_v56  ;;  %v423_v23 = vmul.f32 %v1071_v54, %v1071_v54  ;;  %v384_v53 = vld [vmem:[%s1335_s5] sm:$0x1] }
 0x10f   :  { %v421_v0 = vmul.f32 %v289_v59, %v289_v59  ;;  %v594_v1 = vpop.f32.mrb[13].mxu1  ;;  %v1072_v2 = vpop.f32.mrb[14].mxu0  ;;  %v739_v3 = vadd.f32 %v738_v57, %v724_v55  ;;  %v396_v4 = vadd.f32 %v395_v60, %v289_v59  ;;  %v728_v26 = vmul.f32 %v1103_v58, %v1103_v58 }
 0x110   :  { %v726_v6 = vmul.f32 %v594_v1, %v594_v1  ;;  %v1104_v7 = vpop.f32.mrb[14].mxu1  ;;  %v292_v8 = vpop.f32.mrb[15].mxu0  ;;  %v435_v9 = vadd.f32 %v434_v63, %v420_v61  ;;  %v953_v10 = vpack.c.bf16 %v1072_v2, %v1071_v54  ;;  %v701_v13 = vadd.f32 %v700_v5, %v594_v1 }
 0x111   :  { %v993_v11 = vpack.c.bf16 %v1104_v7, %v1103_v58  ;;  %v597_v12 = vpop.f32.mrb[15].mxu1  ;;  %v740_v14 = vadd.f32 %v739_v3, %v725_v62  ;;  %v948_v15 = vpack.c.bf16 %v292_v8, %v289_v59  ;;  %v397_v17 = vadd.f32 %v396_v4, %v292_v8  ;;  %v408_v59 = vld [vmem:[%s1336_s6] sm:$0x1] }
 0x112   :  { %v436_v16 = vadd.f32 %v435_v9, %v421_v0  ;;  %1001 = vst [vmem:[%s1339_s3 + $0x38] sm:$0xff] %v953_v10   ;;  %v422_v18 = vmul.f32 %v292_v8, %v292_v8  ;;  %v988_v19 = vpack.c.bf16 %v597_v12, %v594_v1  ;;  %v702_v21 = vadd.f32 %v701_v13, %v597_v12  ;;  %v713_v0 = vld [vmem:[%s1338_s8] sm:$0x1] }
 0x113   :  { %1008 = vst [vmem:[%s1340_s4 + $0x38] sm:$0xff] %v993_v11   ;;  %v741_v20 = vadd.f32 %v740_v14, %v726_v6  ;;  %1000 = vst [vmem:[%s1339_s3 + $0x30] sm:$0xff] %v948_v15   ;;  %v727_v22 = vmul.f32 %v597_v12, %v597_v12  ;;  %v398_v24 = vadd.f32 %v1071_v54, %v397_v17 }
 0x114   :  { %v437_v25 = vadd.f32 %v436_v16, %v422_v18  ;;  %1007 = vst [vmem:[%s1340_s4 + $0x30] sm:$0xff] %v988_v19   ;;  %v703_v27 = vadd.f32 %v1103_v58, %v702_v21  ;;  %v424_v29 = vmul.f32 %v1072_v2, %v1072_v2  ;;  %v729_v32 = vmul.f32 %v1104_v7, %v1104_v7  ;;  %v689_v58 = vld [vmem:[%s1337_s7] sm:$0x1] }
 0x115   :  { %v742_v28 = vadd.f32 %v741_v20, %v727_v22  ;;  %v399_v30 = vadd.f32 %v1072_v2, %v398_v24 }
 0x116   :  { %v438_v31 = vadd.f32 %v437_v25, %v423_v23  ;;  %v704_v33 = vadd.f32 %v1104_v7, %v703_v27 }
 0x117   :  { %v743_v34 = vadd.f32 %v742_v28, %v728_v26  ;;  %v400_v35 = vrot.slane %v399_v30, 4 }
 0x118   :  { %v439_v36 = vadd.f32 %v438_v31, %v424_v29  ;;  %v705_v37 = vrot.slane %v704_v33, 4 }
 0x119   :  { %v744_v38 = vadd.f32 %v743_v34, %v729_v32  ;;  %v401_v39 = vadd.f32 %v400_v35, %v399_v30 }
 0x11a   :  { %v440_v40 = vrot.slane %v439_v36, 4  ;;  %v706_v41 = vadd.f32 %v705_v37, %v704_v33 }
 0x11b   :  { %v745_v42 = vrot.slane %v744_v38, 4  ;;  %v402_v43 = vrot.slane %v401_v39, 2 }
 0x11c   :  { %v441_v44 = vadd.f32 %v440_v40, %v439_v36  ;;  %v707_v45 = vrot.slane %v706_v41, 2 }
 0x11d   :  { %v746_v46 = vadd.f32 %v745_v42, %v744_v38  ;;  %v403_v47 = vadd.f32 %v402_v43, %v401_v39 }
 0x11e   :  { %v442_v48 = vrot.slane %v441_v44, 2  ;;  %v708_v49 = vadd.f32 %v707_v45, %v706_v41 }
 0x11f   :  { %v747_v50 = vrot.slane %v746_v46, 2  ;;  %v404_v51 = vrot.slane %v403_v47, 1 }
 0x120   :  { %v443_v52 = vadd.f32 %v442_v48, %v441_v44  ;;  %v709_v54 = vrot.slane %v708_v49, 1 }
 0x121   :  { %v748_v55 = vadd.f32 %v747_v50, %v746_v46  ;;  %v405_v56 = vadd.f32 %v404_v51, %v403_v47 }
 0x122   :  { %v444_v57 = vrot.slane %v443_v52, 1  ;;  %v710_v60 = vadd.f32 %v709_v54, %v708_v49 }
 0x123   :  { %v749_v61 = vrot.slane %v748_v55, 1  ;;  %v406_v62 = vadd.f32 %v405_v56, %v384_v53 }
 0x124   :  { %v445_v63 = vadd.f32 %v444_v57, %v443_v52  ;;  %v711_v1 = vadd.f32 %v710_v60, %v689_v58 }
 0x125   :  { %v750_v2 = vadd.f32 %v749_v61, %v748_v55  ;;  %407 = vst [vmem:[%s1335_s5] sm:$0x1] %v406_v62 }
 0x126   :  { %v446_v3 = vadd.f32 %v445_v63, %v408_v59  ;;  %712 = vst [vmem:[%s1337_s7] sm:$0x1] %v711_v1 }
 0x127   :  { %v751_v4 = vadd.f32 %v750_v2, %v713_v0 }
 0x128   :  { %447 = vst [vmem:[%s1336_s6] sm:$0x1] %v446_v3 }
 0x129   :  { %752 = vst [vmem:[%s1338_s8] sm:$0x1] %v751_v4 }

// kernel: a_call__.6
= control target key start
LH: loop header
LB: loop body
LE: loop exit
PB: predicated region body
PF: predicated region fallthrough
CT: control target
= control target key end

     0   :  { %v642_v16 = vmov 0.0   ;;  %s758_s1 = inlined_call_operand.vmem [shape: bf16[128,128], index: 1, kind: input, shape index: {}]   ;;  %s759_s0 = inlined_call_operand.vmem [shape: bf16[128,128], index: 0, kind: input, shape index: {}]   ;;  %s760_s3 = inlined_call_operand.vmem [shape: f32[8,128], index: 3, kind: output, shape index: {1}]   ;;  %s761_s4 = inlined_call_operand.vmem [shape: f32[8,128], index: 4, kind: output, shape index: {2}]   ;;  %s762_s2 = inlined_call_operand.vmem [shape: bf16[128,128], index: 2, kind: output, shape index: {0}]  }
   0x1   :  { %v626_v0 = vld [vmem:[%s758_s1] sm:$0xff]   ;;  %v627_v1 = vld [vmem:[%s758_s1 + $0x8] sm:$0xff]   ;;  %v628_v2 = vld [vmem:[%s758_s1 + $0x10] sm:$0xff]   ;;  %55 = vst [vmem:[%s760_s3] sm:$0xff] %v642_v16 }
   0x2   :  { %577 = vmatprep.subr.bf16.mxu0 %v626_v0  ;;  %609 = vmatprep.subr.bf16.mxu1 %v626_v0  ;;  %v629_v3 = vld [vmem:[%s758_s1 + $0x18] sm:$0xff]   ;;  %v634_v4 = vld [vmem:[%s759_s0] sm:$0xff]   ;;  %v631_v7 = vld [vmem:[%s758_s1 + $0x28] sm:$0xff]   ;;  %56 = vst [vmem:[%s761_s4] sm:$0xff] %v642_v16 }
   0x3   :  { %578 = vmatpush3.bf16.msra.mxu0 %v626_v0  ;;  %617 = vmatpush3.bf16.msra.mxu1 %v626_v0  ;;  %v630_v5 = vld [vmem:[%s758_s1 + $0x20] sm:$0xff]   ;;  %v632_v8 = vld [vmem:[%s758_s1 + $0x30] sm:$0xff]   ;;  %v633_v9 = vld [vmem:[%s758_s1 + $0x38] sm:$0xff]  }
   0x4   :  { %579 = vmatprep.subr.bf16.mxu0 %v627_v1  ;;  %610 = vmatprep.subr.bf16.mxu1 %v627_v1  ;;  %v638_v6 = vld [vmem:[%s759_s0 + $0x20] sm:$0xff]   ;;  %v635_v10 = vld [vmem:[%s759_s0 + $0x8] sm:$0xff]   ;;  %v636_v12 = vld [vmem:[%s759_s0 + $0x10] sm:$0xff]  }
   0x5   :  { %593 = vmatprep.mubr.bf16.mxu0 %v634_v4  ;;  %601 = vmatprep.mubr.bf16.mxu1 %v638_v6  ;;  %v639_v11 = vld [vmem:[%s759_s0 + $0x28] sm:$0xff]   ;;  %v640_v13 = vld [vmem:[%s759_s0 + $0x30] sm:$0xff]   ;;  %v637_v14 = vld [vmem:[%s759_s0 + $0x18] sm:$0xff]  }
   0x6   :  { %v641_v15 = vld [vmem:[%s759_s0 + $0x38] sm:$0xff]  }
   0x7   :  { %580 = vmatpush3.bf16.msra.mxu0 %v627_v1  ;;  %618 = vmatpush3.bf16.msra.mxu1 %v627_v1 }
   0x8   :  { %581 = vmatprep.subr.bf16.mxu0 %v628_v2  ;;  %611 = vmatprep.subr.bf16.mxu1 %v628_v2 }
   0xb   :  { %582 = vmatpush3.bf16.msra.mxu0 %v628_v2  ;;  %619 = vmatpush3.bf16.msra.mxu1 %v628_v2 }
   0xc   :  { %583 = vmatprep.subr.bf16.mxu0 %v629_v3  ;;  %612 = vmatprep.subr.bf16.mxu1 %v629_v3 }
   0xf   :  { %584 = vmatpush3.bf16.msra.mxu0 %v629_v3  ;;  %620 = vmatpush3.bf16.msra.mxu1 %v629_v3 }
  0x10   :  { %585 = vmatprep.subr.bf16.mxu0 %v630_v5  ;;  %613 = vmatprep.subr.bf16.mxu1 %v630_v5 }
  0x13   :  { %586 = vmatpush3.bf16.msra.mxu0 %v630_v5  ;;  %621 = vmatpush3.bf16.msra.mxu1 %v630_v5 }
  0x14   :  { %587 = vmatprep.subr.bf16.mxu0 %v631_v7  ;;  %614 = vmatprep.subr.bf16.mxu1 %v631_v7 }
  0x17   :  { %588 = vmatpush3.bf16.msra.mxu0 %v631_v7  ;;  %622 = vmatpush3.bf16.msra.mxu1 %v631_v7 }
  0x18   :  { %589 = vmatprep.subr.bf16.mxu0 %v632_v8  ;;  %615 = vmatprep.subr.bf16.mxu1 %v632_v8 }
  0x1b   :  { %590 = vmatpush3.bf16.msra.mxu0 %v632_v8  ;;  %623 = vmatpush3.bf16.msra.mxu1 %v632_v8 }
  0x1c   :  { %591 = vmatprep.subr.bf16.mxu0 %v633_v9  ;;  %616 = vmatprep.subr.bf16.mxu1 %v633_v9 }
  0x1f   :  { %592 = vmatpush3.bf16.msra.mxu0 %v633_v9  ;;  %624 = vmatpush3.bf16.msra.mxu1 %v633_v9 }
  0x22   :  { %594 = vmatmul.mubr.bf16.vlgmr.msra.gmra.mrb[0].mxu0 %v635_v10  ;;  %602 = vmatmul.mubr.bf16.vlgmr.msra.gmra.mrb[0].mxu1 %v639_v11 }
  0x23   :  { %597 = vmatprep.mubr.bf16.mxu0 %v636_v12  ;;  %605 = vmatprep.mubr.bf16.mxu1 %v640_v13 }
  0x2a   :  { %598 = vmatmul.mubr.bf16.gmra.mrb[4].mxu0 %v637_v14  ;;  %606 = vmatmul.mubr.bf16.gmra.mrb[4].mxu1 %v641_v15 }
  0xf5   :  { %v595_v17 = vpop.f32.mrb[0].mxu0  ;;  %v603_v18 = vpop.f32.mrb[0].mxu1 }
  0xf6   :  { %v219_v19 = vpop.f32.mrb[1].mxu0  ;;  %v251_v20 = vpop.f32.mrb[1].mxu1  ;;  %v389_v32 = vmul.f32 %v595_v17, %v595_v17  ;;  %v397_v4 = vmul.f32 %v603_v18, %v603_v18 }
  0xf7   :  { %v596_v21 = vpop.f32.mrb[2].mxu0  ;;  %v604_v22 = vpop.f32.mrb[2].mxu1  ;;  %v387_v23 = vmul.f32 %v219_v19, %v219_v19  ;;  %v395_v62 = vmul.f32 %v251_v20, %v251_v20 }
  0xf8   :  { %v522_v24 = vpack.c.bf16 %v596_v21, %v595_v17  ;;  %v222_v25 = vpop.f32.mrb[3].mxu0  ;;  %v542_v26 = vpack.c.bf16 %v604_v22, %v603_v18  ;;  %v254_v27 = vpop.f32.mrb[3].mxu1  ;;  %v390_v35 = vmul.f32 %v596_v21, %v596_v21  ;;  %v398_v7 = vmul.f32 %v604_v22, %v604_v22 }
  0xf9   :  { %v517_v28 = vpack.c.bf16 %v222_v25, %v219_v19  ;;  %v363_v29 = vadd.f32 %v222_v25, %v219_v19  ;;  %v388_v30 = vmul.f32 %v222_v25, %v222_v25  ;;  %v537_v31 = vpack.c.bf16 %v254_v27, %v251_v20 }
  0xfa   :  { %554 = vst [vmem:[%s762_s2 + $0x8] sm:$0xff] %v522_v24   ;;  %558 = vst [vmem:[%s762_s2 + $0x28] sm:$0xff] %v542_v26   ;;  %v396_v3 = vmul.f32 %v254_v27, %v254_v27 }
  0xfb   :  { %518 = vst [vmem:[%s762_s2] sm:$0xff] %v517_v28   ;;  %v364_v33 = vadd.f32 %v595_v17, %v363_v29  ;;  %v403_v34 = vadd.f32 %v388_v30, %v387_v23  ;;  %557 = vst [vmem:[%s762_s2 + $0x20] sm:$0xff] %v537_v31  }
  0xfd   :  { %v404_v36 = vadd.f32 %v403_v34, %v389_v32  ;;  %v599_v37 = vpop.f32.mrb[4].mxu0  ;;  %v365_v38 = vadd.f32 %v596_v21, %v364_v33  ;;  %v607_v39 = vpop.f32.mrb[4].mxu1  ;;  %v362_v32 = vld [vmem:[%s760_s3] sm:$0x1] }
  0xfe   :  { %v235_v40 = vpop.f32.mrb[5].mxu0  ;;  %v267_v41 = vpop.f32.mrb[5].mxu1  ;;  %v393_v56 = vmul.f32 %v599_v37, %v599_v37  ;;  %v401_v16 = vmul.f32 %v607_v39, %v607_v39 }
  0xff   :  { %v366_v42 = vadd.f32 %v365_v38, %v235_v40  ;;  %v391_v43 = vmul.f32 %v235_v40, %v235_v40  ;;  %v405_v44 = vadd.f32 %v404_v36, %v390_v35  ;;  %v600_v45 = vpop.f32.mrb[6].mxu0  ;;  %v608_v46 = vpop.f32.mrb[6].mxu1  ;;  %v399_v10 = vmul.f32 %v267_v41, %v267_v41  ;;  %v386_v35 = vld [vmem:[%s761_s4] sm:$0x1] }
 0x100   :  { %v532_v47 = vpack.c.bf16 %v600_v45, %v599_v37  ;;  %v238_v48 = vpop.f32.mrb[7].mxu0  ;;  %v552_v49 = vpack.c.bf16 %v608_v46, %v607_v39  ;;  %v270_v50 = vpop.f32.mrb[7].mxu1  ;;  %v394_v59 = vmul.f32 %v600_v45, %v600_v45 }
 0x101   :  { %v406_v51 = vadd.f32 %v405_v44, %v391_v43  ;;  %v527_v52 = vpack.c.bf16 %v238_v48, %v235_v40  ;;  %v367_v53 = vadd.f32 %v366_v42, %v238_v48  ;;  %v392_v54 = vmul.f32 %v238_v48, %v238_v48 }
 0x102   :  { %556 = vst [vmem:[%s762_s2 + $0x18] sm:$0xff] %v532_v47   ;;  %560 = vst [vmem:[%s762_s2 + $0x38] sm:$0xff] %v552_v49   ;;  %v547_v55 = vpack.c.bf16 %v270_v50, %v267_v41  ;;  %v400_v15 = vmul.f32 %v270_v50, %v270_v50 }
 0x103   :  { %555 = vst [vmem:[%s762_s2 + $0x10] sm:$0xff] %v527_v52   ;;  %v368_v57 = vadd.f32 %v599_v37, %v367_v53  ;;  %v407_v58 = vadd.f32 %v406_v51, %v392_v54 }
 0x104   :  { %559 = vst [vmem:[%s762_s2 + $0x30] sm:$0xff] %v547_v55  }
 0x105   :  { %v408_v60 = vadd.f32 %v407_v58, %v393_v56  ;;  %v369_v61 = vadd.f32 %v600_v45, %v368_v57 }
 0x107   :  { %v370_v63 = vadd.f32 %v369_v61, %v251_v20  ;;  %v409_v0 = vadd.f32 %v408_v60, %v394_v59  ;;  %v402_v20 = vmul.f32 %v608_v46, %v608_v46 }
 0x109   :  { %v410_v1 = vadd.f32 %v409_v0, %v395_v62  ;;  %v371_v2 = vadd.f32 %v370_v63, %v254_v27 }
 0x10b   :  { %v372_v5 = vadd.f32 %v603_v18, %v371_v2  ;;  %v411_v6 = vadd.f32 %v410_v1, %v396_v3 }
 0x10d   :  { %v412_v8 = vadd.f32 %v411_v6, %v397_v4  ;;  %v373_v9 = vadd.f32 %v604_v22, %v372_v5 }
 0x10f   :  { %v374_v11 = vadd.f32 %v373_v9, %v267_v41  ;;  %v413_v12 = vadd.f32 %v412_v8, %v398_v7 }
 0x111   :  { %v414_v13 = vadd.f32 %v413_v12, %v399_v10  ;;  %v375_v14 = vadd.f32 %v374_v11, %v270_v50 }
 0x113   :  { %v376_v17 = vadd.f32 %v607_v39, %v375_v14  ;;  %v415_v19 = vadd.f32 %v414_v13, %v400_v15 }
 0x115   :  { %v377_v21 = vadd.f32 %v608_v46, %v376_v17  ;;  %v416_v23 = vadd.f32 %v415_v19, %v401_v16 }
 0x117   :  { %v378_v24 = vrot.slane %v377_v21, 4  ;;  %v417_v25 = vadd.f32 %v416_v23, %v402_v20 }
 0x119   :  { %v379_v26 = vadd.f32 %v378_v24, %v377_v21  ;;  %v418_v18 = vrot.slane %v417_v25, 4 }
 0x11b   :  { %v380_v27 = vrot.slane %v379_v26, 2  ;;  %v419_v28 = vadd.f32 %v418_v18, %v417_v25 }
 0x11d   :  { %v381_v29 = vadd.f32 %v380_v27, %v379_v26  ;;  %v420_v22 = vrot.slane %v419_v28, 2 }
 0x11f   :  { %v382_v30 = vrot.slane %v381_v29, 1  ;;  %v421_v31 = vadd.f32 %v420_v22, %v419_v28 }
 0x121   :  { %v383_v33 = vadd.f32 %v382_v30, %v381_v29  ;;  %v422_v34 = vrot.slane %v421_v31, 1 }
 0x123   :  { %v384_v36 = vadd.f32 %v383_v33, %v362_v32  ;;  %v423_v37 = vadd.f32 %v422_v34, %v421_v31 }
 0x125   :  { %385 = vst [vmem:[%s760_s3] sm:$0x1] %v384_v36  ;;  %v424_v38 = vadd.f32 %v423_v37, %v386_v35 }
 0x127   :  { %425 = vst [vmem:[%s761_s4] sm:$0x1] %v424_v38 }

// kernel: a_call__.7
= control target key start
LH: loop header
LB: loop body
LE: loop exit
PB: predicated region body
PF: predicated region fallthrough
CT: control target
= control target key end

     0   :  { %s528_s0 = inlined_call_operand.vmem [shape: bf16[128,128], index: 0, kind: input, shape index: {}]   ;;  %s529_s1 = inlined_call_operand.vmem [shape: f32[1,128], index: 1, kind: input, shape index: {}]   ;;  %s530_s2 = inlined_call_operand.vmem [shape: f32[1,128], index: 2, kind: input, shape index: {}]   ;;  %s531_s3 = inlined_call_operand.vmem [shape: bf16[128,128], index: 3, kind: input, shape index: {}]   ;;  %s532_s4 = inlined_call_operand.vmem [shape: f32[1,128], index: 4, kind: input, shape index: {}]   ;;  %s533_s5 = inlined_call_operand.vmem [shape: f32[1,128], index: 5, kind: input, shape index: {}]   ;;  %s534_s6 = inlined_call_operand.vmem [shape: f32[128,128], index: 6, kind: output, shape index: {}]  }
   0x1   :  { %v236_v0 = vld [vmem:[%s528_s0] sm:$0xff]   ;;  %v299_v9 = vld [vmem:[%s528_s0 + $0x8] sm:$0xff]   ;;  %v300_v20 = vld [vmem:[%s528_s0 + $0x10] sm:$0xff]  }
   0x2   :  { %v354_v1 = vld [vmem:[%s529_s1] ss:$0 sm:$0xff]  ;;  %v237_v2 = vunpack.c.l.bf16 %v236_v0  ;;  %v238_v5 = vunpack.c.h.bf16 %v236_v0  ;;  %v306_v10 = vld [vmem:[%s531_s3 + $0x8] sm:$0xff]   ;;  %v241_v14 = vunpack.c.l.bf16 %v299_v9  ;;  %v242_v18 = vunpack.c.h.bf16 %v299_v9  ;;  %v307_v21 = vld [vmem:[%s531_s3 + $0x10] sm:$0xff]  }
   0x3   :  { %v268_v3 = vld [vmem:[%s531_s3] sm:$0xff]   ;;  %v273_v15 = vunpack.c.l.bf16 %v306_v10  ;;  %v274_v19 = vunpack.c.h.bf16 %v306_v10  ;;  %v245_v32 = vunpack.c.l.bf16 %v300_v20  ;;  %v277_v33 = vunpack.c.l.bf16 %v307_v21  ;;  %v301_v42 = vld [vmem:[%s528_s0 + $0x18] sm:$0xff]  }
   0x4   :  { %v362_v4 = vld [vmem:[%s532_s4] ss:$0 sm:$0xff]  ;;  %v269_v7 = vunpack.c.l.bf16 %v268_v3  ;;  %v270_v8 = vunpack.c.h.bf16 %v268_v3  ;;  %v62_v11 = vmul.f32 %v237_v2, %v354_v1  ;;  %v63_v13 = vmul.f32 %v238_v5, %v354_v1  ;;  %v308_v43 = vld [vmem:[%s531_s3 + $0x18] sm:$0xff]  }
   0x5   :  { %v367_v6 = vld [vmem:[%s530_s2] ss:$0 sm:$0xff]  ;;  %v64_v24 = vmul.f32 %v241_v14, %v354_v1  ;;  %v142_v25 = vmul.f32 %v273_v15, %v362_v4  ;;  %v65_v28 = vmul.f32 %v242_v18, %v354_v1  ;;  %v143_v29 = vmul.f32 %v274_v19, %v362_v4  ;;  %v303_v14 = vld [vmem:[%s528_s0 + $0x28] sm:$0xff]  }
   0x6   :  { %v379_v12 = vld [vmem:[%s533_s5] ss:$0 sm:$0xff]  ;;  %v140_v16 = vmul.f32 %v269_v7, %v362_v4  ;;  %v141_v17 = vmul.f32 %v270_v8, %v362_v4  ;;  %v85_v22 = vadd.f32 %v367_v6, %v62_v11  ;;  %v86_v23 = vadd.f32 %v367_v6, %v63_v13  ;;  %v310_v19 = vld [vmem:[%s531_s3 + $0x28] sm:$0xff]  }
   0x7   :  { %v87_v30 = vadd.f32 %v367_v6, %v64_v24  ;;  %v165_v31 = vadd.f32 %v379_v12, %v142_v25  ;;  %v88_v36 = vadd.f32 %v367_v6, %v65_v28  ;;  %v166_v37 = vadd.f32 %v379_v12, %v143_v29  ;;  %v302_v52 = vld [vmem:[%s528_s0 + $0x20] sm:$0xff]  }
   0x8   :  { %v163_v26 = vadd.f32 %v379_v12, %v140_v16  ;;  %v164_v27 = vadd.f32 %v379_v12, %v141_v17  ;;  %v66_v39 = vmul.f32 %v245_v32, %v354_v1  ;;  %v144_v40 = vmul.f32 %v277_v33, %v362_v4  ;;  %v309_v57 = vld [vmem:[%s531_s3 + $0x20] sm:$0xff]   ;;  %v304_v32 = vld [vmem:[%s528_s0 + $0x30] sm:$0xff]  }
   0x9   :  { %v181_v38 = vadd.f32 %v165_v31, %v87_v30  ;;  %v246_v41 = vunpack.c.h.bf16 %v300_v20  ;;  %v182_v46 = vadd.f32 %v166_v37, %v88_v36  ;;  %v278_v47 = vunpack.c.h.bf16 %v307_v21  ;;  %v311_v33 = vld [vmem:[%s531_s3 + $0x30] sm:$0xff]  }
   0xa   :  { %v179_v34 = vadd.f32 %v163_v26, %v85_v22  ;;  %v180_v35 = vadd.f32 %v164_v27, %v86_v23  ;;  %v89_v49 = vadd.f32 %v367_v6, %v66_v39  ;;  %v167_v50 = vadd.f32 %v379_v12, %v144_v40 }
   0xb   :  { %v197_v48 = vmax.f32 %v181_v38, 0.0  ;;  %v67_v51 = vmul.f32 %v246_v41, %v354_v1  ;;  %v198_v53 = vmax.f32 %v182_v46, 0.0  ;;  %v145_v54 = vmul.f32 %v278_v47, %v362_v4  ;;  %v305_v46 = vld [vmem:[%s528_s0 + $0x38] sm:$0xff]  }
   0xc   :  { %v195_v44 = vmax.f32 %v179_v34, 0.0  ;;  %v196_v45 = vmax.f32 %v180_v35, 0.0  ;;  %v249_v55 = vunpack.c.l.bf16 %v301_v42  ;;  %v281_v56 = vunpack.c.l.bf16 %v308_v43 }
   0xd   :  { %213 = vst [vmem:[%s534_s6 + $0x10] sm:$0xff] %v197_v48  ;;  %v183_v58 = vadd.f32 %v167_v50, %v89_v49  ;;  %v90_v59 = vadd.f32 %v367_v6, %v67_v51  ;;  %v250_v60 = vunpack.c.h.bf16 %v301_v42  ;;  %v282_v61 = vunpack.c.h.bf16 %v308_v43  ;;  %214 = vst [vmem:[%s534_s6 + $0x18] sm:$0xff] %v198_v53 }
   0xe   :  { %211 = vst [vmem:[%s534_s6] sm:$0xff] %v195_v44  ;;  %212 = vst [vmem:[%s534_s6 + $0x8] sm:$0xff] %v196_v45  ;;  %v168_v62 = vadd.f32 %v379_v12, %v145_v54  ;;  %v68_v63 = vmul.f32 %v249_v55, %v354_v1  ;;  %v146_v0 = vmul.f32 %v281_v56, %v362_v4  ;;  %v253_v2 = vunpack.c.l.bf16 %v302_v52  ;;  %v312_v55 = vld [vmem:[%s531_s3 + $0x38] sm:$0xff]  }
   0xf   :  { %v199_v3 = vmax.f32 %v183_v58, 0.0  ;;  %v69_v5 = vmul.f32 %v250_v60, %v354_v1  ;;  %v147_v7 = vmul.f32 %v282_v61, %v362_v4  ;;  %v285_v8 = vunpack.c.l.bf16 %v309_v57 }
  0x10   :  { %v184_v9 = vadd.f32 %v168_v62, %v90_v59  ;;  %v91_v10 = vadd.f32 %v367_v6, %v68_v63  ;;  %v169_v11 = vadd.f32 %v379_v12, %v146_v0  ;;  %v70_v13 = vmul.f32 %v253_v2, %v354_v1 }
  0x11   :  { %215 = vst [vmem:[%s534_s6 + $0x20] sm:$0xff] %v199_v3  ;;  %v92_v15 = vadd.f32 %v367_v6, %v69_v5  ;;  %v170_v16 = vadd.f32 %v379_v12, %v147_v7  ;;  %v148_v17 = vmul.f32 %v285_v8, %v362_v4  ;;  %v254_v18 = vunpack.c.h.bf16 %v302_v52 }
  0x12   :  { %v200_v20 = vmax.f32 %v184_v9, 0.0  ;;  %v185_v21 = vadd.f32 %v169_v11, %v91_v10  ;;  %v93_v22 = vadd.f32 %v367_v6, %v70_v13  ;;  %v286_v23 = vunpack.c.h.bf16 %v309_v57 }
  0x13   :  { %v186_v24 = vadd.f32 %v170_v16, %v92_v15  ;;  %v171_v25 = vadd.f32 %v379_v12, %v148_v17  ;;  %v71_v26 = vmul.f32 %v254_v18, %v354_v1  ;;  %v257_v27 = vunpack.c.l.bf16 %v303_v14 }
  0x14   :  { %216 = vst [vmem:[%s534_s6 + $0x28] sm:$0xff] %v200_v20  ;;  %v201_v28 = vmax.f32 %v185_v21, 0.0  ;;  %v149_v29 = vmul.f32 %v286_v23, %v362_v4  ;;  %v289_v30 = vunpack.c.l.bf16 %v310_v19  ;;  %v258_v31 = vunpack.c.h.bf16 %v303_v14 }
  0x15   :  { %v202_v34 = vmax.f32 %v186_v24, 0.0  ;;  %v187_v35 = vadd.f32 %v171_v25, %v93_v22  ;;  %v94_v36 = vadd.f32 %v367_v6, %v71_v26  ;;  %v72_v37 = vmul.f32 %v257_v27, %v354_v1 }
  0x16   :  { %217 = vst [vmem:[%s534_s6 + $0x30] sm:$0xff] %v201_v28  ;;  %v172_v38 = vadd.f32 %v379_v12, %v149_v29  ;;  %v150_v39 = vmul.f32 %v289_v30, %v362_v4  ;;  %v73_v40 = vmul.f32 %v258_v31, %v354_v1  ;;  %v290_v41 = vunpack.c.h.bf16 %v310_v19 }
  0x17   :  { %218 = vst [vmem:[%s534_s6 + $0x38] sm:$0xff] %v202_v34  ;;  %v203_v42 = vmax.f32 %v187_v35, 0.0  ;;  %v95_v43 = vadd.f32 %v367_v6, %v72_v37  ;;  %v261_v44 = vunpack.c.l.bf16 %v304_v32  ;;  %v293_v45 = vunpack.c.l.bf16 %v311_v33 }
  0x18   :  { %v188_v47 = vadd.f32 %v172_v38, %v94_v36  ;;  %v173_v48 = vadd.f32 %v379_v12, %v150_v39  ;;  %v96_v49 = vadd.f32 %v367_v6, %v73_v40  ;;  %v151_v50 = vmul.f32 %v290_v41, %v362_v4 }
  0x19   :  { %219 = vst [vmem:[%s534_s6 + $0x40] sm:$0xff] %v203_v42  ;;  %v74_v51 = vmul.f32 %v261_v44, %v354_v1  ;;  %v152_v52 = vmul.f32 %v293_v45, %v362_v4  ;;  %v262_v53 = vunpack.c.h.bf16 %v304_v32  ;;  %v294_v54 = vunpack.c.h.bf16 %v311_v33 }
  0x1a   :  { %v204_v56 = vmax.f32 %v188_v47, 0.0  ;;  %v189_v57 = vadd.f32 %v173_v48, %v95_v43  ;;  %v174_v58 = vadd.f32 %v379_v12, %v151_v50  ;;  %v265_v59 = vunpack.c.l.bf16 %v305_v46 }
  0x1b   :  { %v97_v60 = vadd.f32 %v367_v6, %v74_v51  ;;  %v175_v61 = vadd.f32 %v379_v12, %v152_v52  ;;  %v75_v62 = vmul.f32 %v262_v53, %v354_v1  ;;  %v153_v63 = vmul.f32 %v294_v54, %v362_v4 }
  0x1c   :  { %220 = vst [vmem:[%s534_s6 + $0x48] sm:$0xff] %v204_v56  ;;  %v205_v0 = vmax.f32 %v189_v57, 0.0  ;;  %v190_v2 = vadd.f32 %v174_v58, %v96_v49  ;;  %v76_v3 = vmul.f32 %v265_v59, %v354_v1  ;;  %v297_v5 = vunpack.c.l.bf16 %v312_v55 }
  0x1d   :  { %v191_v7 = vadd.f32 %v175_v61, %v97_v60  ;;  %v98_v8 = vadd.f32 %v367_v6, %v75_v62  ;;  %v176_v9 = vadd.f32 %v379_v12, %v153_v63  ;;  %v266_v10 = vunpack.c.h.bf16 %v305_v46 }
  0x1e   :  { %221 = vst [vmem:[%s534_s6 + $0x50] sm:$0xff] %v205_v0  ;;  %v206_v11 = vmax.f32 %v190_v2, 0.0  ;;  %v99_v13 = vadd.f32 %v367_v6, %v76_v3  ;;  %v154_v14 = vmul.f32 %v297_v5, %v362_v4  ;;  %v298_v15 = vunpack.c.h.bf16 %v312_v55 }
  0x1f   :  { %v207_v16 = vmax.f32 %v191_v7, 0.0  ;;  %v192_v17 = vadd.f32 %v176_v9, %v98_v8  ;;  %v77_v18 = vmul.f32 %v266_v10, %v354_v1 }
  0x20   :  { %222 = vst [vmem:[%s534_s6 + $0x58] sm:$0xff] %v206_v11  ;;  %v177_v19 = vadd.f32 %v379_v12, %v154_v14  ;;  %v155_v20 = vmul.f32 %v298_v15, %v362_v4 }
  0x21   :  { %223 = vst [vmem:[%s534_s6 + $0x60] sm:$0xff] %v207_v16  ;;  %v208_v21 = vmax.f32 %v192_v17, 0.0  ;;  %v100_v22 = vadd.f32 %v367_v6, %v77_v18 }
  0x22   :  { %v193_v23 = vadd.f32 %v177_v19, %v99_v13  ;;  %v178_v24 = vadd.f32 %v379_v12, %v155_v20 }
  0x23   :  { %224 = vst [vmem:[%s534_s6 + $0x68] sm:$0xff] %v208_v21 }
  0x24   :  { %v209_v1 = vmax.f32 %v193_v23, 0.0  ;;  %v194_v25 = vadd.f32 %v178_v24, %v100_v22 }
  0x26   :  { %225 = vst [vmem:[%s534_s6 + $0x70] sm:$0xff] %v209_v1  ;;  %v210_v4 = vmax.f32 %v194_v25, 0.0 }
  0x28   :  { %226 = vst [vmem:[%s534_s6 + $0x78] sm:$0xff] %v210_v4 }

</bundles_post_ra>
